<compile_context>
chip_gen: v6e
topology: v6e:2x2x1
jax: 0.10.0
libtpu: 0.0.40
codegen_flags: <defaults>
</compile_context>

<pallas_src>
import jax
import jax.numpy as jnp
from jax.experimental import pallas as pl
from jax.experimental.pallas import tpu as pltpu


_LANE = 128
_NEG_INF = -1e30
_LN_EPS = 1e-5


def _round_up(x, m):
    return (x + m - 1) // m * m


def _vmem_limit_bytes():
    """48 MiB on v7x (64 MiB physical VMEM/TC), ~100 MiB on v5e/v6e (128 MiB)."""
    try:
        cap = int(pltpu.get_tpu_info().vmem_capacity_bytes)
    except Exception:
        cap = 64 * 1024 * 1024
    if cap <= 64 * 1024 * 1024:
        return 48 * 1024 * 1024
    return 100 * 1024 * 1024


def _layer_norm_masked(x_f32, d_true, d_pad):
    """F.layer_norm over the (possibly zero-padded) last dim, no affine, eps=1e-5.

    Padded feature columns are zero on entry; stats use the true feature count
    and padded columns are re-zeroed on exit so they contribute nothing to the
    Q.K^T contraction.
    """
    inv_d = 1.0 / d_true
    mu = jnp.sum(x_f32, axis=-1, keepdims=True) * inv_d
    ms = jnp.sum(x_f32 * x_f32, axis=-1, keepdims=True) * inv_d
    var = ms - mu * mu
    y = (x_f32 - mu) * jax.lax.rsqrt(var + _LN_EPS)
    if d_true < d_pad:
        col = jax.lax.broadcasted_iota(jnp.int32, y.shape, 1)
        y = jnp.where(col < d_true, y, 0.0)
    return y


def _softmax_store_and_output(scores, v_bf16, n_true, n_pad, attw_dtype,
                              attw_ref, za_ref):
    """Masked, numerically-stable softmax; writes attw and Z_A for this tile."""
    if n_true < n_pad:  # padded key columns must receive zero softmax mass
        kcol = jax.lax.broadcasted_iota(jnp.int32, scores.shape, 1)
        scores = jnp.where(kcol < n_true, scores, _NEG_INF)
    m = jnp.max(scores, axis=-1, keepdims=True)
    # bf16 exp: exp is the binding unit for small/medium D on v6e/v7x
    # (bf16 EUP ~2x); on v5e this is widened to f32 by the compiler.
    e = jnp.exp((scores - m).astype(jnp.bfloat16))
    denom = jnp.sum(e.astype(jnp.float32), axis=-1, keepdims=True)
    inv = pl.reciprocal(denom, approx=True)            # EUP slot
    attw_ref[...] = (e.astype(jnp.float32) * inv).astype(attw_dtype)
    # Unnormalized e @ V, then scale the (rows, D) result by 1/denom.
    za_ref[...] = jnp.dot(e, v_bf16, preferred_element_type=jnp.float32) * inv


# --------------------------- fused single-tile path ---------------------------

def _make_fused_kernel(n_true, n_pad, d_true, d_pad, attw_dtype):
    def kernel(z_ref, wq_ref, bq_ref, wk_ref, bk_ref, wv_ref, bv_ref,
               za_ref, attw_ref):
        z = z_ref[...]                                   # bf16

        def proj(w_ref, b_ref):
            return (jnp.dot(z, w_ref[...], preferred_element_type=jnp.float32)
                    + b_ref[...])

        qn = _layer_norm_masked(proj(wq_ref, bq_ref), d_true, d_pad).astype(jnp.bfloat16)
        kn = _layer_norm_masked(proj(wk_ref, bk_ref), d_true, d_pad).astype(jnp.bfloat16)
        v = proj(wv_ref, bv_ref).astype(jnp.bfloat16)

        # scores = Qn @ Kn^T via dot_general contracting last dims (no transpose copy)
        scores = jax.lax.dot_general(
            qn, kn, dimension_numbers=(((1,), (1,)), ((), ())),
            preferred_element_type=jnp.float32)
        _softmax_store_and_output(scores, v, n_true, n_pad, attw_dtype,
                                  attw_ref, za_ref)

    return kernel


# ------------------------------ two-pass path ---------------------------------

def _make_kv_kernel(d_true, d_pad):
    def kernel(z_ref, wk_ref, bk_ref, wv_ref, bv_ref, kn_ref, v_ref):
        z = z_ref[...]                                   # bf16
        k = jnp.dot(z, wk_ref[...], preferred_element_type=jnp.float32) + bk_ref[...]
        v = jnp.dot(z, wv_ref[...], preferred_element_type=jnp.float32) + bv_ref[...]
        kn_ref[...] = _layer_norm_masked(k, d_true, d_pad).astype(jnp.bfloat16)
        v_ref[...] = v.astype(jnp.bfloat16)

    return kernel


def _make_attention_kernel(n_true, n_pad, d_true, d_pad, attw_dtype):
    def kernel(z_ref, wq_ref, bq_ref, kn_ref, v_ref, za_ref, attw_ref):
        z = z_ref[...]                                   # bf16
        q = jnp.dot(z, wq_ref[...], preferred_element_type=jnp.float32) + bq_ref[...]
        qn = _layer_norm_masked(q, d_true, d_pad).astype(jnp.bfloat16)
        scores = jax.lax.dot_general(
            qn, kn_ref[...], dimension_numbers=(((1,), (1,)), ((), ())),
            preferred_element_type=jnp.float32)
        _softmax_store_and_output(scores, v_ref[...], n_true, n_pad, attw_dtype,
                                  attw_ref, za_ref)

    return kernel


def _pick_pass1_tile(n_pad, d_pad, vmem_limit):
    budget = vmem_limit - 8 * 1024 * 1024
    resident = 2 * d_pad * d_pad * 2 + 2 * d_pad * 4     # Wk, Wv (bf16, 1-buf) + biases
    for t in (2048, 1024, 512, 256, 128):
        if n_pad % t != 0:
            continue
        per_tile = (2 * t * d_pad * 2        # z tile (bf16) double-buffered
                    + 2 * 2 * t * d_pad * 2  # kn, v output tiles double-buffered
                    + 2 * t * d_pad * 4)     # f32 k/v intermediates
        if resident + per_tile <= budget:
            return t
    return 128


def _pick_attention_tile(n_pad, d_pad, vmem_limit, attw_bytes):
    budget = vmem_limit - 8 * 1024 * 1024
    # Resident across the whole grid (single-buffered via pl.Buffered(1)):
    resident = 2 * n_pad * d_pad * 2          # Kn + V (bf16)
    resident += d_pad * d_pad * 2 + d_pad * 4  # Wq (bf16) + bq (f32)
    # TODO(synk): when the resident Kn/V slab exceeds ~1/4 of the VMEM budget
    # (very large N*D, especially v7x's 64 MiB), switch to a key-tiled grid axis
    # with flash-style online softmax instead of full K/V residency.
    for tq in (512, 256, 128):                # prefer multiples of 256 (v6e/v7x MXU)
        if n_pad % tq != 0:
            continue
        if n_pad // tq < 2:                   # keep >=2 query tiles (v7x megacore)
            continue
        per_tile = (2 * tq * d_pad * 2            # z tile (bf16), double-buffered
                    + 2 * tq * d_pad * 4          # Z_A tile (f32), double-buffered
                    + 2 * tq * n_pad * attw_bytes  # attw slab, double-buffered
                    + tq * n_pad * (4 + 2)        # scores f32 + exp bf16 temps
                    + 2 * tq * d_pad * 4)         # q / qn working set
        if resident + per_tile <= budget:
            return tq
    return 128


# --------------------------------- wrapper ------------------------------------

def simple_global_attention(z0, wq, bq, wk, bk, wv, bv, *, attw_dtype=jnp.bfloat16):
    """z0: (N, D) f32.  w*: (D, D) already transposed (in, out).  b*: (1, D) f32.

    Returns (Z_A (N, D) f32, attention_weights (N, N) attw_dtype).
    attw_dtype defaults to bf16: the N^2 writeback dominates HBM traffic and
    bf16 halves it; pass jnp.float32 if exact-width weights are required.
    """
    n, d = z0.shape
    n_pad = _round_up(max(n, _LANE), _LANE)
    d_pad = _round_up(max(d, _LANE), _LANE)
    vmem_limit = _vmem_limit_bytes()
    attw_bytes = jnp.dtype(attw_dtype).itemsize

    # Zero-pad rows (nodes) and feature columns; cast MXU operands to bf16 once.
    z_p = jnp.pad(z0, ((0, n_pad - n), (0, d_pad - d))).astype(jnp.bfloat16)

    def pad_w(w):
        return jnp.pad(w, ((0, d_pad - d), (0, d_pad - d))).astype(jnp.bfloat16)

    def pad_b(b):
        return jnp.pad(b, ((0, 0), (0, d_pad - d)))      # stays f32

    wq_p, wk_p, wv_p = pad_w(wq), pad_w(wk), pad_w(wv)
    bq_p, bk_p, bv_p = pad_b(bq), pad_b(bk), pad_b(bv)

    # ---- small problems: one fused kernel (no second launch / Kn,V round trip) ----
    if n_pad <= 256:
        cost = pl.CostEstimate(
            flops=6 * n_pad * d_pad * d_pad + 4 * n_pad * n_pad * d_pad,
            transcendentals=n_pad * n_pad + 3 * n_pad,
            bytes_accessed=(n_pad * d_pad * 2 + 3 * d_pad * d_pad * 2
                            + 3 * d_pad * 4 + n_pad * d_pad * 4
                            + n_pad * n_pad * attw_bytes))
        za_p, attw_p = pl.pallas_call(
            _make_fused_kernel(n, n_pad, d, d_pad, attw_dtype),
            out_shape=(jax.ShapeDtypeStruct((n_pad, d_pad), jnp.float32),
                       jax.ShapeDtypeStruct((n_pad, n_pad), attw_dtype)),
            compiler_params=pltpu.CompilerParams(vmem_limit_bytes=vmem_limit),
            cost_estimate=cost,
        )(z_p, wq_p, bq_p, wk_p, bk_p, wv_p, bv_p)
        return za_p[:n, :d], attw_p[:n, :n]

    # ---- general two-pass path ----
    cparams = pltpu.CompilerParams(
        dimension_semantics=("parallel",),
        vmem_limit_bytes=vmem_limit)

    # pass 1: K (layer-normed) and V projections, large row tiles
    t1 = _pick_pass1_tile(n_pad, d_pad, vmem_limit)
    row1 = pl.BlockSpec((t1, d_pad), lambda i: (i, 0))
    w1_spec = pl.BlockSpec((d_pad, d_pad), lambda i: (0, 0),
                           pipeline_mode=pl.Buffered(1))
    b1_spec = pl.BlockSpec((1, d_pad), lambda i: (0, 0),
                           pipeline_mode=pl.Buffered(1))
    cost1 = pl.CostEstimate(
        flops=4 * n_pad * d_pad * d_pad,
        transcendentals=2 * n_pad,
        bytes_accessed=(n_pad * d_pad * 2 + 2 * d_pad * d_pad * 2
                        + 2 * d_pad * 4 + 2 * n_pad * d_pad * 2))
    kn, v = pl.pallas_call(
        _make_kv_kernel(d, d_pad),
        out_shape=(jax.ShapeDtypeStruct((n_pad, d_pad), jnp.bfloat16),
                   jax.ShapeDtypeStruct((n_pad, d_pad), jnp.bfloat16)),
        grid=(n_pad // t1,),
        in_specs=[row1, w1_spec, b1_spec, w1_spec, b1_spec],
        out_specs=(row1, row1),
        compiler_params=cparams,
        cost_estimate=cost1,
    )(z_p, wk_p, bk_p, wv_p, bv_p)

    # pass 2: attention tiled over query rows; Kn/V single-buffered VMEM residents
    tq = _pick_attention_tile(n_pad, d_pad, vmem_limit, attw_bytes)
    rowq = pl.BlockSpec((tq, d_pad), lambda i: (i, 0))
    w_spec = pl.BlockSpec((d_pad, d_pad), lambda i: (0, 0),
                          pipeline_mode=pl.Buffered(1))
    b_spec = pl.BlockSpec((1, d_pad), lambda i: (0, 0),
                          pipeline_mode=pl.Buffered(1))
    kv_spec = pl.BlockSpec((n_pad, d_pad), lambda i: (0, 0),
                           pipeline_mode=pl.Buffered(1))
    attw_spec = pl.BlockSpec((tq, n_pad), lambda i: (i, 0))
    cost2 = pl.CostEstimate(
        flops=2 * n_pad * d_pad * d_pad + 4 * n_pad * n_pad * d_pad,
        transcendentals=n_pad * n_pad + 2 * n_pad,
        bytes_accessed=(n_pad * d_pad * 2 + d_pad * d_pad * 2 + d_pad * 4
                        + 2 * n_pad * d_pad * 2 + n_pad * d_pad * 4
                        + n_pad * n_pad * attw_bytes))
    za_p, attw_p = pl.pallas_call(
        _make_attention_kernel(n, n_pad, d, d_pad, attw_dtype),
        out_shape=(jax.ShapeDtypeStruct((n_pad, d_pad), jnp.float32),
                   jax.ShapeDtypeStruct((n_pad, n_pad), attw_dtype)),
        grid=(n_pad // tq,),
        in_specs=[rowq, w_spec, b_spec, kv_spec, kv_spec],
        out_specs=(rowq, attw_spec),
        compiler_params=cparams,
        cost_estimate=cost2,
    )(z_p, wq_p, bq_p, kn, v)

    return za_p[:n, :d], attw_p[:n, :n]


# --------------------------------- reference ----------------------------------

def _reference(z0, wq, bq, wk, bk, wv, bv):
    q = z0 @ wq + bq
    k = z0 @ wk + bk
    v = z0 @ wv + bv

    def ln(x):
        mu = jnp.mean(x, axis=-1, keepdims=True)
        var = jnp.mean((x - mu) ** 2, axis=-1, keepdims=True)
        return (x - mu) / jnp.sqrt(var + 1e-5)

    qn, kn = ln(q), ln(k)
    scores = qn @ kn.T
    w = jax.nn.softmax(scores, axis=-1)
    return w @ v, w


if __name__ == "__main__":
    def run_case(n, d, key):
        ks = jax.random.split(key, 7)
        z0 = jax.random.normal(ks[0], (n, d), dtype=jnp.float32)
        bound = 1.0 / (d ** 0.5)

        def init_w(k):  # nn.Linear weight (out,in) -> pass W.T so kernel does z @ w
            return jax.random.uniform(k, (d, d), jnp.float32, -bound, bound).T

        def init_b(k):
            return jax.random.uniform(k, (1, d), jnp.float32, -bound, bound)

        wq, bq = init_w(ks[1]), init_b(ks[2])
        wk, bk = init_w(ks[3]), init_b(ks[4])
        wv, bv = init_w(ks[5]), init_b(ks[6])

        za, attw = simple_global_attention(z0, wq, bq, wk, bk, wv, bv)
        jax.block_until_ready((za, attw))

        za_ref, attw_ref = _reference(z0, wq, bq, wk, bk, wv, bv)
        assert za.shape == (n, d)
        assert attw.shape == (n, n)
        # bf16 MXU operands, bf16 attw storage, approx reciprocal -> relaxed tol.
        assert jnp.allclose(za, za_ref, atol=5e-2, rtol=5e-2), \
            f"(n={n}) Z_A max err {jnp.max(jnp.abs(za - za_ref))}"
        assert jnp.allclose(attw.astype(jnp.float32), attw_ref, atol=5e-2, rtol=5e-2), \
            f"(n={n}) attw max err {jnp.max(jnp.abs(attw.astype(jnp.float32) - attw_ref))}"

    key = jax.random.PRNGKey(0)
    k1, k2 = jax.random.split(key)
    run_case(8, 32, k1)      # num_nodes=8, in_features=32: fused single-tile path
    run_case(300, 32, k2)    # multi-tile: exercises the two-pass pipelined path
    print("KERNEL_OK")
</pallas_src>

<mosaic_0001>
module attributes {stable_mosaic.version = 11 : i64} {
  func.func @kernel(%arg0: memref<128x128xbf16, #tpu.memory_space<vmem>>, %arg1: memref<128x128xbf16, #tpu.memory_space<vmem>>, %arg2: memref<1x128xf32, #tpu.memory_space<vmem>>, %arg3: memref<128x128xbf16, #tpu.memory_space<vmem>>, %arg4: memref<1x128xf32, #tpu.memory_space<vmem>>, %arg5: memref<128x128xbf16, #tpu.memory_space<vmem>>, %arg6: memref<1x128xf32, #tpu.memory_space<vmem>>, %arg7: memref<128x128xf32, #tpu.memory_space<vmem>>, %arg8: memref<128x128xbf16, #tpu.memory_space<vmem>>) attributes {dimension_semantics = [], scalar_prefetch = 0 : i64, scratch_operands = 0 : i64, tpu.core_type = #tpu.core_type<tc>} {
    %c0 = arith.constant 0 : index
    %c0_0 = arith.constant 0 : index
    %0 = vector.load %arg0[%c0, %c0_0] : memref<128x128xbf16, #tpu.memory_space<vmem>>, vector<128x128xbf16>
    %c0_1 = arith.constant 0 : index
    %c0_2 = arith.constant 0 : index
    %1 = vector.load %arg1[%c0_1, %c0_2] : memref<128x128xbf16, #tpu.memory_space<vmem>>, vector<128x128xbf16>
    %cst = arith.constant dense<0.000000e+00> : vector<128x128xf32>
    %2 = tpu.matmul %0, %1, %cst {dimension_numbers = #tpu.dot_dimension_numbers<[1], [0], [0], [1], [0, 0, 1, 1], [], []>} : vector<128x128xbf16>, vector<128x128xbf16>, vector<128x128xf32> -> vector<128x128xf32>
    %c0_3 = arith.constant 0 : index
    %c0_4 = arith.constant 0 : index
    %3 = vector.load %arg2[%c0_3, %c0_4] : memref<1x128xf32, #tpu.memory_space<vmem>>, vector<1x128xf32>
    %4 = vector.broadcast %3 : vector<1x128xf32> to vector<128x128xf32>
    %5 = arith.addf %2, %4 : vector<128x128xf32>
    %cst_5 = arith.constant dense<0.000000e+00> : vector<128xf32>
    %6 = vector.multi_reduction <add>, %5, %cst_5 [1] : vector<128x128xf32> to vector<128xf32>
    %7 = vector.shape_cast %6 : vector<128xf32> to vector<128x1xf32>
    %cst_6 = arith.constant 3.125000e-02 : f32
    %8 = vector.broadcast %cst_6 : f32 to vector<128x1xf32>
    %9 = arith.mulf %7, %8 : vector<128x1xf32>
    %10 = arith.mulf %5, %5 : vector<128x128xf32>
    %cst_7 = arith.constant dense<0.000000e+00> : vector<128xf32>
    %11 = vector.multi_reduction <add>, %10, %cst_7 [1] : vector<128x128xf32> to vector<128xf32>
    %12 = vector.shape_cast %11 : vector<128xf32> to vector<128x1xf32>
    %cst_8 = arith.constant 3.125000e-02 : f32
    %13 = vector.broadcast %cst_8 : f32 to vector<128x1xf32>
    %14 = arith.mulf %12, %13 : vector<128x1xf32>
    %15 = arith.mulf %9, %9 : vector<128x1xf32>
    %16 = arith.subf %14, %15 : vector<128x1xf32>
    %17 = vector.broadcast %9 : vector<128x1xf32> to vector<128x128xf32>
    %18 = arith.subf %5, %17 : vector<128x128xf32>
    %cst_9 = arith.constant 9.99999974E-6 : f32
    %19 = vector.broadcast %cst_9 : f32 to vector<128x1xf32>
    %20 = arith.addf %16, %19 : vector<128x1xf32>
    %21 = math.rsqrt %20 : vector<128x1xf32>
    %22 = vector.broadcast %21 : vector<128x1xf32> to vector<128x128xf32>
    %23 = arith.mulf %18, %22 : vector<128x128xf32>
    %24 = tpu.iota {dimensions = array<i32: 1>} : vector<128x128xi32>
    %c32_i32 = arith.constant 32 : i32
    %25 = vector.broadcast %c32_i32 : i32 to vector<128x128xi32>
    %26 = arith.cmpi slt, %24, %25 : vector<128x128xi32>
    %cst_10 = arith.constant 0.000000e+00 : f32
    %27 = vector.broadcast %cst_10 : f32 to vector<128x128xf32>
    %28 = arith.select %26, %23, %27 : vector<128x128xi1>, vector<128x128xf32>
    %29 = arith.truncf %28 : vector<128x128xf32> to vector<128x128xbf16>
    %c0_11 = arith.constant 0 : index
    %c0_12 = arith.constant 0 : index
    %30 = vector.load %arg3[%c0_11, %c0_12] : memref<128x128xbf16, #tpu.memory_space<vmem>>, vector<128x128xbf16>
    %cst_13 = arith.constant dense<0.000000e+00> : vector<128x128xf32>
    %31 = tpu.matmul %0, %30, %cst_13 {dimension_numbers = #tpu.dot_dimension_numbers<[1], [0], [0], [1], [0, 0, 1, 1], [], []>} : vector<128x128xbf16>, vector<128x128xbf16>, vector<128x128xf32> -> vector<128x128xf32>
    %c0_14 = arith.constant 0 : index
    %c0_15 = arith.constant 0 : index
    %32 = vector.load %arg4[%c0_14, %c0_15] : memref<1x128xf32, #tpu.memory_space<vmem>>, vector<1x128xf32>
    %33 = vector.broadcast %32 : vector<1x128xf32> to vector<128x128xf32>
    %34 = arith.addf %31, %33 : vector<128x128xf32>
    %cst_16 = arith.constant dense<0.000000e+00> : vector<128xf32>
    %35 = vector.multi_reduction <add>, %34, %cst_16 [1] : vector<128x128xf32> to vector<128xf32>
    %36 = vector.shape_cast %35 : vector<128xf32> to vector<128x1xf32>
    %cst_17 = arith.constant 3.125000e-02 : f32
    %37 = vector.broadcast %cst_17 : f32 to vector<128x1xf32>
    %38 = arith.mulf %36, %37 : vector<128x1xf32>
    %39 = arith.mulf %34, %34 : vector<128x128xf32>
    %cst_18 = arith.constant dense<0.000000e+00> : vector<128xf32>
    %40 = vector.multi_reduction <add>, %39, %cst_18 [1] : vector<128x128xf32> to vector<128xf32>
    %41 = vector.shape_cast %40 : vector<128xf32> to vector<128x1xf32>
    %cst_19 = arith.constant 3.125000e-02 : f32
    %42 = vector.broadcast %cst_19 : f32 to vector<128x1xf32>
    %43 = arith.mulf %41, %42 : vector<128x1xf32>
    %44 = arith.mulf %38, %38 : vector<128x1xf32>
    %45 = arith.subf %43, %44 : vector<128x1xf32>
    %46 = vector.broadcast %38 : vector<128x1xf32> to vector<128x128xf32>
    %47 = arith.subf %34, %46 : vector<128x128xf32>
    %cst_20 = arith.constant 9.99999974E-6 : f32
    %48 = vector.broadcast %cst_20 : f32 to vector<128x1xf32>
    %49 = arith.addf %45, %48 : vector<128x1xf32>
    %50 = math.rsqrt %49 : vector<128x1xf32>
    %51 = vector.broadcast %50 : vector<128x1xf32> to vector<128x128xf32>
    %52 = arith.mulf %47, %51 : vector<128x128xf32>
    %53 = tpu.iota {dimensions = array<i32: 1>} : vector<128x128xi32>
    %c32_i32_21 = arith.constant 32 : i32
    %54 = vector.broadcast %c32_i32_21 : i32 to vector<128x128xi32>
    %55 = arith.cmpi slt, %53, %54 : vector<128x128xi32>
    %cst_22 = arith.constant 0.000000e+00 : f32
    %56 = vector.broadcast %cst_22 : f32 to vector<128x128xf32>
    %57 = arith.select %55, %52, %56 : vector<128x128xi1>, vector<128x128xf32>
    %58 = arith.truncf %57 : vector<128x128xf32> to vector<128x128xbf16>
    %c0_23 = arith.constant 0 : index
    %c0_24 = arith.constant 0 : index
    %59 = vector.load %arg5[%c0_23, %c0_24] : memref<128x128xbf16, #tpu.memory_space<vmem>>, vector<128x128xbf16>
    %cst_25 = arith.constant dense<0.000000e+00> : vector<128x128xf32>
    %60 = tpu.matmul %0, %59, %cst_25 {dimension_numbers = #tpu.dot_dimension_numbers<[1], [0], [0], [1], [0, 0, 1, 1], [], []>} : vector<128x128xbf16>, vector<128x128xbf16>, vector<128x128xf32> -> vector<128x128xf32>
    %c0_26 = arith.constant 0 : index
    %c0_27 = arith.constant 0 : index
    %61 = vector.load %arg6[%c0_26, %c0_27] : memref<1x128xf32, #tpu.memory_space<vmem>>, vector<1x128xf32>
    %62 = vector.broadcast %61 : vector<1x128xf32> to vector<128x128xf32>
    %63 = arith.addf %60, %62 : vector<128x128xf32>
    %64 = arith.truncf %63 : vector<128x128xf32> to vector<128x128xbf16>
    %cst_28 = arith.constant dense<0.000000e+00> : vector<128x128xf32>
    %65 = tpu.matmul %29, %58, %cst_28 {dimension_numbers = #tpu.dot_dimension_numbers<[1], [1], [0], [0], [0, 0, 1, 0], [], []>} : vector<128x128xbf16>, vector<128x128xbf16>, vector<128x128xf32> -> vector<128x128xf32>
    %66 = tpu.iota {dimensions = array<i32: 1>} : vector<128x128xi32>
    %c8_i32 = arith.constant 8 : i32
    %67 = vector.broadcast %c8_i32 : i32 to vector<128x128xi32>
    %68 = arith.cmpi slt, %66, %67 : vector<128x128xi32>
    %cst_29 = arith.constant -1.000000e+30 : f32
    %69 = vector.broadcast %cst_29 : f32 to vector<128x128xf32>
    %70 = arith.select %68, %65, %69 : vector<128x128xi1>, vector<128x128xf32>
    %cst_30 = arith.constant dense<0xFF800000> : vector<128xf32>
    %71 = vector.multi_reduction <maximumf>, %70, %cst_30 [1] : vector<128x128xf32> to vector<128xf32>
    %72 = vector.shape_cast %71 : vector<128xf32> to vector<128x1xf32>
    %73 = vector.broadcast %72 : vector<128x1xf32> to vector<128x128xf32>
    %74 = arith.subf %70, %73 : vector<128x128xf32>
    %75 = arith.truncf %74 : vector<128x128xf32> to vector<128x128xbf16>
    %76 = math.exp %75 : vector<128x128xbf16>
    %77 = arith.extf %76 : vector<128x128xbf16> to vector<128x128xf32>
    %cst_31 = arith.constant dense<0.000000e+00> : vector<128xf32>
    %78 = vector.multi_reduction <add>, %77, %cst_31 [1] : vector<128x128xf32> to vector<128xf32>
    %79 = vector.shape_cast %78 : vector<128xf32> to vector<128x1xf32>
    %80 = tpu.reciprocal %79 {approx = true} : vector<128x1xf32> -> vector<128x1xf32>
    %81 = arith.extf %76 : vector<128x128xbf16> to vector<128x128xf32>
    %82 = vector.broadcast %80 : vector<128x1xf32> to vector<128x128xf32>
    %83 = arith.mulf %81, %82 : vector<128x128xf32>
    %84 = arith.truncf %83 : vector<128x128xf32> to vector<128x128xbf16>
    %c0_32 = arith.constant 0 : index
    %c0_33 = arith.constant 0 : index
    %85 = vector.load %arg8[%c0_32, %c0_33] : memref<128x128xbf16, #tpu.memory_space<vmem>>, vector<128x128xbf16>
    tpu.vector_store %arg8[%c0_32, %c0_33], %84 {strides = array<i32>} : memref<128x128xbf16, #tpu.memory_space<vmem>>, vector<128x128xbf16>,
    %cst_34 = arith.constant dense<0.000000e+00> : vector<128x128xf32>
    %86 = tpu.matmul %76, %64, %cst_34 {dimension_numbers = #tpu.dot_dimension_numbers<[1], [0], [0], [1], [0, 0, 1, 1], [], []>} : vector<128x128xbf16>, vector<128x128xbf16>, vector<128x128xf32> -> vector<128x128xf32>
    %87 = vector.broadcast %80 : vector<128x1xf32> to vector<128x128xf32>
    %88 = arith.mulf %86, %87 : vector<128x128xf32>
    %c0_35 = arith.constant 0 : index
    %c0_36 = arith.constant 0 : index
    %89 = vector.load %arg7[%c0_35, %c0_36] : memref<128x128xf32, #tpu.memory_space<vmem>>, vector<128x128xf32>
    tpu.vector_store %arg7[%c0_35, %c0_36], %88 {strides = array<i32>} : memref<128x128xf32, #tpu.memory_space<vmem>>, vector<128x128xf32>,
    return
  }
}

</mosaic_0001>

<bundles_post_ra>
// kernel: tpu_custom_call.1
= control target key start
LH: loop header
LB: loop body
LE: loop exit
PB: predicated region body
PF: predicated region fallthrough
CT: control target
= control target key end

     0   :  { %14 = vsyncpa [#allocation3], 0  ;;  %s3183_s0 = inlined_call_operand.hbm [shape: bf16[128,128], index: 0, kind: input, shape index: {}]   ;;  %s3184_s1 = inlined_call_operand.hbm [shape: bf16[128,128], index: 1, kind: input, shape index: {}]   ;;  %s3185_s2 = inlined_call_operand.vmem [shape: f32[1,128], index: 2, kind: input, shape index: {}]   ;;  %s3186_s3 = inlined_call_operand.hbm [shape: bf16[128,128], index: 3, kind: input, shape index: {}]   ;;  %s3187_s4 = inlined_call_operand.vmem [shape: f32[1,128], index: 4, kind: input, shape index: {}]   ;;  %s3188_s5 = inlined_call_operand.hbm [shape: bf16[128,128], index: 5, kind: input, shape index: {}]   ;;  %s3189_s6 = inlined_call_operand.vmem [shape: f32[1,128], index: 6, kind: input, shape index: {}]   ;;  %s3190_s7 = inlined_call_operand.hbm [shape: f32[128,128], index: 7, kind: output, shape index: {0}]   ;;  %s3191_s8 = inlined_call_operand.hbm [shape: bf16[128,128], index: 8, kind: output, shape index: {1}]  }
   0x1   :  { %15 = vsyncpa [#allocation6], 0 }
   0x2   :  { %16 = vsyncpa [#allocation9], 0 }
   0x3   :  { %17 = vsyncpa [#allocation4], 0 }
   0x4   :  { %18 = vsyncpa [#allocation12], 0  ;;  %s2333_s27 = smov [#allocation5]   ;;  %s2334_s29 = smov [#allocation2]  }
   0x5   :  { %s36_s28 = sshll.u32 %s2333_s27, 4  ;;  %s24_s30 = sshll.u32 %s2334_s29, 4  ;;  %s37_s28 = int_to_ptr.vmem [resolvable:$true] %s36_s28  ;;  %s25_s30 = int_to_ptr.vmem [resolvable:$true] %s24_s30 }
   0x6   :  { %s2211_s9 = scalar_lea.vmem %s37_s28, 1024  ;;  %p2216_p1 = scmp.lt.s32.totalorder %s37_s28, %s37_s28 }
   0x7   :  { %p2212_p0 = scmp.ne.s32.totalorder %s37_s28, %s2211_s9  ;;  %p2217_p2 = scmp.lt.s32.totalorder %s2211_s9, %s2211_s9 }
   0x9   :  { %p2218_p3 = por %p2217_p2, %p2216_p1 }
   0xb   :  { %p2219_p4 = pnand %p2218_p3, %p2212_p0 }
   0xd   :  { %2222 = shalt.err (!%p2219_p4)
}
   0xe   :  { %s2335_s10 = smov 64   ;;  %s2336_s11 = smov 4  }
   0xf   :  { %42 = dma.hbm_to_vmem [thread:$0]  %s3184_s1, 1024, %s37_s28, [#allocation6], %s2335_s10, %s2335_s10, %s2336_s11  }
  0x10   :  { %s2231_s14 = scalar_lea.vmem %s25_s30, 1024  ;;  %p2236_p6 = scmp.lt.s32.totalorder %s25_s30, %s25_s30 }
  0x11   :  { %p2232_p5 = scmp.ne.s32.totalorder %s25_s30, %s2231_s14  ;;  %p2237_p7 = scmp.lt.s32.totalorder %s2231_s14, %s2231_s14 }
  0x13   :  { %p2238_p8 = por %p2237_p7, %p2236_p6 }
  0x15   :  { %p2239_p9 = pnand %p2238_p8, %p2232_p5 }
  0x17   :  { %2242 = shalt.err (!%p2239_p9)
}
  0x18   :  { %30 = dma.hbm_to_vmem [thread:$0]  %s3183_s0, 1024, %s25_s30, [#allocation3], %s2335_s10, %s2335_s10, %s2336_s11  }
  0x19   :  { %s2337_s17 = smov [#allocation7]   ;;  %s2338_s19 = smov [#allocation8]  }
  0x1a   :  { %s50_s18 = sshll.u32 %s2337_s17, 4  ;;  %s64_s20 = sshll.u32 %s2338_s19, 4  ;;  %s51_s18 = int_to_ptr.vmem [resolvable:$true] %s50_s18  ;;  %s65_s20 = int_to_ptr.vmem [resolvable:$true] %s64_s20 }
  0x1b   :  { %s2251_s1 = scalar_lea.vmem %s51_s18, 1024  ;;  %p2256_p11 = scmp.lt.s32.totalorder %s51_s18, %s51_s18 }
  0x1c   :  { %p2252_p10 = scmp.ne.s32.totalorder %s51_s18, %s2251_s1  ;;  %p2257_p12 = scmp.lt.s32.totalorder %s2251_s1, %s2251_s1 }
  0x1e   :  { %p2258_p13 = por %p2257_p12, %p2256_p11 }
  0x20   :  { %p2259_p0 = pnand %p2258_p13, %p2252_p10 }
  0x22   :  { %2262 = shalt.err (!%p2259_p0)
}
  0x23   :  { %56 = dma.hbm_to_vmem [thread:$0]  %s3186_s3, 1024, %s51_s18, [#allocation6], %s2335_s10, %s2335_s10, %s2336_s11  }
  0x24   :  { %s2271_s0 = scalar_lea.vmem %s65_s20, 1024  ;;  %p2276_p2 = scmp.lt.s32.totalorder %s65_s20, %s65_s20 }
  0x25   :  { %p2272_p1 = scmp.ne.s32.totalorder %s65_s20, %s2271_s0  ;;  %p2277_p3 = scmp.lt.s32.totalorder %s2271_s0, %s2271_s0 }
  0x27   :  { %p2278_p4 = por %p2277_p3, %p2276_p2 }
  0x29   :  { %p2279_p5 = pnand %p2278_p4, %p2272_p1 }
  0x2b   :  { %2282 = shalt.err (!%p2279_p5)
}
  0x2c   :  { %70 = dma.hbm_to_vmem [thread:$0]  %s3188_s5, 1024, %s65_s20, [#allocation9], %s2335_s10, %s2335_s10, %s2336_s11  }
  0x2d   :  { %2323 = dma.done.wait [#allocation3], 1024  }
  0x2e   :  { %2324 = vsyncadd [#allocation3], 4294966272 }
  0x2f   :  { %2325 = dma.done.wait [#allocation6], 2048  }
  0x30   :  { %2326 = vsyncadd [#allocation6], 4294965248 }
  0x31   :  { %2327 = dma.done.wait [#allocation9], 1024  }
  0x32   :  { %2328 = vsyncadd [#allocation9], 4294966272  ;;  %v2059_v0 = vld [vmem:[#allocation7 + $0x38] sm:$0xff]   ;;  %v2060_v1 = vld [vmem:[#allocation7 + $0x30] sm:$0xff]  }
  0x33   :  { %1921 = vmatprep.subr.bf16.mxu1 %v2059_v0  ;;  %v2061_v2 = vld [vmem:[#allocation7 + $0x28] sm:$0xff]   ;;  %v2062_v3 = vld [vmem:[#allocation7 + $0x20] sm:$0xff]   ;;  %v2063_v5 = vld [vmem:[#allocation7 + $0x18] sm:$0xff]  }
  0x34   :  { %1922 = vmatpush3.bf16.msra.mxu1 %v2059_v0  ;;  %v2067_v4 = vld [vmem:[#allocation2] sm:$0xff]   ;;  %v2064_v6 = vld [vmem:[#allocation7 + $0x10] sm:$0xff]   ;;  %v2075_v7 = vld [vmem:[#allocation5 + $0x38] sm:$0xff]  }
  0x35   :  { %1923 = vmatprep.subr.bf16.mxu1 %v2060_v1  ;;  %1937 = vmatprep.mubr.bf16.mxu1 %v2067_v4  ;;  %v2076_v8 = vld [vmem:[#allocation5 + $0x30] sm:$0xff]   ;;  %v2065_v9 = vld [vmem:[#allocation7 + $0x8] sm:$0xff]   ;;  %v2066_v11 = vld [vmem:[#allocation7] sm:$0xff]  }
  0x36   :  { %1905 = vmatprep.mubr.bf16.mxu0 %v2067_v4  ;;  %1889 = vmatprep.subr.bf16.mxu0 %v2075_v7  ;;  %v2077_v10 = vld [vmem:[#allocation5 + $0x28] sm:$0xff]   ;;  %v2078_v12 = vld [vmem:[#allocation5 + $0x20] sm:$0xff]   ;;  %v2079_v13 = vld [vmem:[#allocation5 + $0x18] sm:$0xff]  }
  0x37   :  { %1890 = vmatpush3.bf16.msra.mxu0 %v2075_v7  ;;  %v2412_v14 = vld [vmem:[#allocation2 + $0x8] sm:$0xff]   ;;  %v2414_v15 = vld [vmem:[#allocation2 + $0x10] sm:$0xff]   ;;  %v2418_v18 = vld [vmem:[#allocation2 + $0x18] sm:$0xff]  }
  0x38   :  { %1924 = vmatpush3.bf16.msra.mxu1 %v2060_v1  ;;  %1891 = vmatprep.subr.bf16.mxu0 %v2076_v8  ;;  %v2080_v16 = vld [vmem:[#allocation5 + $0x10] sm:$0xff]   ;;  %v2081_v17 = vld [vmem:[#allocation5 + $0x8] sm:$0xff]   ;;  %v2420_v19 = vld [vmem:[#allocation2 + $0x20] sm:$0xff]  }
  0x39   :  { %1925 = vmatprep.subr.bf16.mxu1 %v2061_v2  ;;  %v2082_v20 = vld [vmem:[#allocation5] sm:$0xff]   ;;  %v2424_v21 = vld [vmem:[#allocation2 + $0x28] sm:$0xff]   ;;  %v2426_v22 = vld [vmem:[#allocation2 + $0x30] sm:$0xff]  }
  0x3a   :  { %v2432_v23 = vld [vmem:[#allocation2 + $0x38] sm:$0xff]   ;;  %v2451_v28 = vld [vmem:[%s3187_s4] ss:$0 sm:$0xff] }
  0x3b   :  { %1892 = vmatpush3.bf16.msra.mxu0 %v2076_v8 }
  0x3c   :  { %1926 = vmatpush3.bf16.msra.mxu1 %v2061_v2  ;;  %1893 = vmatprep.subr.bf16.mxu0 %v2077_v10 }
  0x3d   :  { %1927 = vmatprep.subr.bf16.mxu1 %v2062_v3 }
  0x3f   :  { %1894 = vmatpush3.bf16.msra.mxu0 %v2077_v10  ;;  %v2553_v10 = vld [vmem:[%s3185_s2] ss:$0 sm:$0xff] }
  0x40   :  { %1928 = vmatpush3.bf16.msra.mxu1 %v2062_v3  ;;  %1895 = vmatprep.subr.bf16.mxu0 %v2078_v12 }
  0x41   :  { %1929 = vmatprep.subr.bf16.mxu1 %v2063_v5 }
  0x43   :  { %1896 = vmatpush3.bf16.msra.mxu0 %v2078_v12 }
  0x44   :  { %1930 = vmatpush3.bf16.msra.mxu1 %v2063_v5  ;;  %1897 = vmatprep.subr.bf16.mxu0 %v2079_v13 }
  0x45   :  { %1931 = vmatprep.subr.bf16.mxu1 %v2064_v6 }
  0x47   :  { %1898 = vmatpush3.bf16.msra.mxu0 %v2079_v13 }
  0x48   :  { %1932 = vmatpush3.bf16.msra.mxu1 %v2064_v6  ;;  %1899 = vmatprep.subr.bf16.mxu0 %v2080_v16 }
  0x49   :  { %1933 = vmatprep.subr.bf16.mxu1 %v2065_v9 }
  0x4b   :  { %1900 = vmatpush3.bf16.msra.mxu0 %v2080_v16 }
  0x4c   :  { %1934 = vmatpush3.bf16.msra.mxu1 %v2065_v9  ;;  %1901 = vmatprep.subr.bf16.mxu0 %v2081_v17 }
  0x4d   :  { %1935 = vmatprep.subr.bf16.mxu1 %v2066_v11 }
  0x4f   :  { %1902 = vmatpush3.bf16.msra.mxu0 %v2081_v17 }
  0x50   :  { %1936 = vmatpush3.bf16.msra.mxu1 %v2066_v11  ;;  %1903 = vmatprep.subr.bf16.mxu0 %v2082_v20 }
  0x53   :  { %1938 = vmatmul.mubr.bf16.vlgmr.msra.gmra.mxu1 %v2412_v14  ;;  %1904 = vmatpush3.bf16.msra.mxu0 %v2082_v20 }
  0x54   :  { %1941 = vmatprep.mubr.bf16.mxu1 %v2414_v15 }
  0x56   :  { %1906 = vmatmul.mubr.bf16.vlgmr.msra.gmra.mxu0 %v2412_v14 }
  0x57   :  { %1909 = vmatprep.mubr.bf16.mxu0 %v2414_v15 }
  0x5b   :  { %1942 = vmatmul.mubr.bf16.gmra.mxu1 %v2418_v18 }
  0x5c   :  { %1945 = vmatprep.mubr.bf16.mxu1 %v2420_v19 }
  0x5e   :  { %1910 = vmatmul.mubr.bf16.gmra.mxu0 %v2418_v18 }
  0x5f   :  { %1913 = vmatprep.mubr.bf16.mxu0 %v2420_v19 }
  0x63   :  { %1946 = vmatmul.mubr.bf16.gmra.mxu1 %v2424_v21 }
  0x64   :  { %1949 = vmatprep.mubr.bf16.mxu1 %v2426_v22 }
  0x66   :  { %1914 = vmatmul.mubr.bf16.gmra.mxu0 %v2424_v21 }
  0x67   :  { %1917 = vmatprep.mubr.bf16.mxu0 %v2426_v22 }
  0x6b   :  { %1950 = vmatmul.mubr.bf16.gmra.mxu1 %v2432_v23 }
  0x6e   :  { %1918 = vmatmul.mubr.bf16.gmra.mxu0 %v2432_v23 }
  0x6f   :  { %1969 = vmatprep.mubr.bf16.mxu0 %v2067_v4 }
 0x113   :  { %v2440_v24 = vpop.f32.mrf.mxu1 }
 0x114   :  { %v2525_v0 = vadd.f32 %v2440_v24, %v2451_v28 }
 0x115   :  { %v2442_v25 = vpop.f32.mrf.mxu1 }
 0x116   :  { %v771_v3 = vmul.f32 %v2525_v0, %v2525_v0  ;;  %v1907_v4 = vpop.f32.mrf.mxu0  ;;  %v2539_v5 = vadd.f32 %v2451_v28, %v2442_v25 }
 0x117   :  { %v2444_v26 = vpop.f32.mrf.mxu1  ;;  %v2563_v17 = vadd.f32 %v1907_v4, %v2553_v10 }
 0x118   :  { %v2532_v2 = vadd.f32 %v2444_v26, %v2451_v28  ;;  %v255_v7 = vpop.f32.mrf.mxu0  ;;  %v769_v9 = vmul.f32 %v2539_v5, %v2539_v5 }
 0x119   :  { %v2446_v27 = vpop.f32.mrf.mxu1  ;;  %v2557_v12 = vadd.f32 %v2553_v10, %v255_v7 }
 0x11a   :  { %v772_v6 = vmul.f32 %v2532_v2, %v2532_v2  ;;  %v2546_v8 = vadd.f32 %v2451_v28, %v2446_v27  ;;  %v1908_v11 = vpop.f32.mrf.mxu0 }
 0x11b   :  { %v1943_v29 = vpop.f32.mrf.mxu1  ;;  %v2571_v25 = vadd.f32 %v1908_v11, %v2553_v10  ;;  %v366_v26 = vmul.f32 %v2557_v12, %v2557_v12 }
 0x11c   :  { %v2454_v30 = vadd.f32 %v1943_v29, %v2451_v28  ;;  %v770_v13 = vmul.f32 %v2546_v8, %v2546_v8  ;;  %v258_v16 = vpop.f32.mrf.mxu0  ;;  %v368_v29 = vmul.f32 %v2563_v17, %v2563_v17 }
 0x11d   :  { %v674_v31 = vpop.f32.mrf.mxu1  ;;  %v2566_v20 = vadd.f32 %v2553_v10, %v258_v16 }
 0x11e   :  { %733 = vadd.xlane.f32.xlu0 %v2454_v30  ;;  %v775_v34 = vmul.f32 %v2454_v30, %v2454_v30  ;;  %v2508_v57 = vadd.f32 %v2451_v28, %v674_v31  ;;  %v1911_v24 = vpop.f32.mrf.mxu0 }
 0x11f   :  { %v1944_v32 = vpop.f32.mrf.mxu1 }
 0x120   :  { %v2458_v33 = vadd.f32 %v1944_v32, %v2451_v28  ;;  %v773_v60 = vmul.f32 %v2508_v57, %v2508_v57  ;;  %v271_v27 = vpop.f32.mrf.mxu0 }
 0x121   :  { %v677_v35 = vpop.f32.mrf.mxu1  ;;  %v2581_v32 = vadd.f32 %v2553_v10, %v271_v27 }
 0x122   :  { %797 = vadd.xlane.f32.xlu0 %v775_v34  ;;  %735 = vadd.xlane.f32.xlu1 %v2458_v33  ;;  %v776_v38 = vmul.f32 %v2458_v33, %v2458_v33  ;;  %v2500_v55 = vadd.f32 %v2451_v28, %v677_v35  ;;  %v1912_v31 = vpop.f32.mrf.mxu0  ;;  %v369_v34 = vmul.f32 %v2571_v25, %v2571_v25 }
 0x123   :  { %v1947_v36 = vpop.f32.mrf.mxu1  ;;  %3203 = vst [vmem:[#allocation18_spill] sm:$0xff] %v2581_v32 }
 0x124   :  { %v2464_v37 = vadd.f32 %v1947_v36, %v2451_v28  ;;  %v774_v58 = vmul.f32 %v2500_v55, %v2500_v55  ;;  %v274_v35 = vpop.f32.mrf.mxu0  ;;  %v2587_v36 = vadd.f32 %v1911_v24, %v2553_v10 }
 0x125   :  { %v690_v39 = vpop.f32.mrf.mxu1 }
 0x126   :  { %799 = vadd.xlane.f32.xlu1 %v776_v38  ;;  %741 = vadd.xlane.f32.xlu0 %v2464_v37  ;;  %v779_v42 = vmul.f32 %v2464_v37, %v2464_v37  ;;  %v2476_v43 = vadd.f32 %v2451_v28, %v690_v39  ;;  %3204 = vst [vmem:[#allocation19_spill] sm:$0xff] %v2587_v36  ;;  %v1915_v39 = vpop.f32.mrf.mxu0 }
 0x127   :  { %v1948_v40 = vpop.f32.mrf.mxu1  ;;  %v2590_v38 = vadd.f32 %v2553_v10, %v274_v35 }
 0x128   :  { %v2470_v41 = vadd.f32 %v1948_v40, %v2451_v28  ;;  %v777_v47 = vmul.f32 %v2476_v43, %v2476_v43  ;;  %v2595_v40 = vadd.f32 %v1912_v31, %v2553_v10 }
 0x129   :  { %v693_v45 = vpop.f32.mrf.mxu1 }
 0x12a   :  { %805 = vadd.xlane.f32.xlu0 %v779_v42  ;;  %743 = vadd.xlane.f32.xlu1 %v2470_v41  ;;  %v780_v44 = vmul.f32 %v2470_v41, %v2470_v41  ;;  %v2482_v46 = vadd.f32 %v2451_v28, %v693_v45  ;;  %3205 = vst [vmem:[#allocation20_spill] sm:$0xff] %v2595_v40 }
 0x12b   :  { %v1951_v48 = vpop.f32.mrf.mxu1  ;;  %v370_v42 = vmul.f32 %v2581_v32, %v2581_v32  ;;  %v371_v45 = vmul.f32 %v2590_v38, %v2590_v38 }
 0x12c   :  { %v2487_v49 = vadd.f32 %v1951_v48, %v2451_v28  ;;  %v778_v50 = vmul.f32 %v2482_v46, %v2482_v46 }
 0x12d   :  { %v706_v52 = vpop.f32.mrf.mxu1 }
 0x12e   :  { %807 = vadd.xlane.f32.xlu1 %v780_v44  ;;  %737 = vadd.xlane.f32.xlu0 %v2476_v43  ;;  %v783_v51 = vmul.f32 %v2487_v49, %v2487_v49  ;;  %v2496_v53 = vadd.f32 %v2451_v28, %v706_v52  ;;  %v287_v44 = vpop.f32.mrf.mxu0 }
 0x12f   :  { %v1952_v54 = vpop.f32.mrf.mxu1 }
 0x130   :  { %v2503_v56 = vadd.f32 %v1952_v54, %v2451_v28  ;;  %v781_v63 = vmul.f32 %v2496_v53, %v2496_v53  ;;  %v1916_v48 = vpop.f32.mrf.mxu0  ;;  %v2611_v54 = vadd.f32 %v1915_v39, %v2553_v10  ;;  %v2083_v39 = vld [vmem:[#allocation8 + $0x38] sm:$0xff]  }
 0x131   :  { %v709_v61 = vpop.f32.mrf.mxu1  ;;  %1953 = vmatprep.subr.bf16.mxu0 %v2083_v39 }
 0x132   :  { %739 = vadd.xlane.f32.xlu1 %v2482_v46  ;;  %801 = vadd.xlane.f32.xlu0 %v777_v47  ;;  %v784_v59 = vmul.f32 %v2503_v56, %v2503_v56  ;;  %v2518_v62 = vadd.f32 %v2451_v28, %v709_v61  ;;  %v367_v28 = vmul.f32 %v2566_v20, %v2566_v20  ;;  %v290_v52 = vpop.f32.mrf.mxu0 }
 0x133   :  { %v372_v47 = vmul.f32 %v2587_v36, %v2587_v36  ;;  %3207 = vst [vmem:[#allocation22_spill] sm:$0xff] %v2611_v54  ;;  %1954 = vmatpush3.bf16.msra.mxu0 %v2083_v39 }
 0x134   :  { %v782_v1 = vmul.f32 %v2518_v62, %v2518_v62 }
 0x136   :  { %803 = vadd.xlane.f32.xlu1 %v778_v50  ;;  %749 = vadd.xlane.f32.xlu0 %v2487_v49  ;;  %v2605_v50 = vadd.f32 %v2553_v10, %v287_v44 }
 0x138   :  { %3206 = vst [vmem:[#allocation21_spill] sm:$0xff] %v2605_v50  ;;  %v374_v61 = vmul.f32 %v2605_v50, %v2605_v50 }
 0x13a   :  { %813 = vadd.xlane.f32.xlu1 %v783_v51  ;;  %745 = vadd.xlane.f32.xlu0 %v2496_v53  ;;  %v373_v51 = vmul.f32 %v2595_v40, %v2595_v40 }
 0x13e   :  { %751 = vadd.xlane.f32.xlu0 %v2503_v56  ;;  %731 = vadd.xlane.f32.xlu1 %v2500_v55 }
 0x142   :  { %795 = vadd.xlane.f32.xlu1 %v774_v58  ;;  %729 = vadd.xlane.f32.xlu0 %v2508_v57  ;;  %v2614_v58 = vadd.f32 %v2553_v10, %v290_v52 }
 0x144   :  { %3208 = vst [vmem:[#allocation23_spill] sm:$0xff] %v2614_v58 }
 0x146   :  { %815 = vadd.xlane.f32.xlu1 %v784_v59  ;;  %793 = vadd.xlane.f32.xlu0 %v773_v60  ;;  %v1919_v59 = vpop.f32.mrf.mxu0  ;;  %v2619_v60 = vadd.f32 %v1916_v48, %v2553_v10  ;;  %v2084_v48 = vld [vmem:[#allocation8 + $0x30] sm:$0xff]  }
 0x147   :  { %v2635_v11 = vadd.f32 %v1919_v59, %v2553_v10  ;;  %1955 = vmatprep.subr.bf16.mxu0 %v2084_v48  ;;  %v2085_v59 = vld [vmem:[#allocation8 + $0x28] sm:$0xff]  }
 0x148   :  { %3209 = vst [vmem:[#allocation24_spill] sm:$0xff] %v2619_v60  ;;  %v377_v7 = vmul.f32 %v2619_v60, %v2619_v60  ;;  %1956 = vmatpush3.bf16.msra.mxu0 %v2084_v48  ;;  %v2089_v48 = vld [vmem:[#allocation8 + $0x8] sm:$0xff]  }
 0x149   :  { %3211 = vst [vmem:[#allocation26_spill] sm:$0xff] %v2635_v11  ;;  %v380_v27 = vmul.f32 %v2635_v11, %v2635_v11  ;;  %1957 = vmatprep.subr.bf16.mxu0 %v2085_v59 }
 0x14a   :  { %747 = vadd.xlane.f32.xlu1 %v2518_v62  ;;  %809 = vadd.xlane.f32.xlu0 %v781_v63  ;;  %v303_v63 = vpop.f32.mrf.mxu0 }
 0x14c   :  { %v1920_v4 = vpop.f32.mrf.mxu0  ;;  %1958 = vmatpush3.bf16.msra.mxu0 %v2085_v59 }
 0x14d   :  { %v2643_v16 = vadd.f32 %v1920_v4, %v2553_v10 }
 0x14e   :  { %811 = vadd.xlane.f32.xlu1 %v782_v1  ;;  %725 = vadd.xlane.f32.xlu0 %v2525_v0  ;;  %v375_v1 = vmul.f32 %v2614_v58, %v2614_v58 }
 0x14f   :  { %3213 = vst [vmem:[#allocation28_spill] sm:$0xff] %v2643_v16 }
 0x152   :  { %727 = vadd.xlane.f32.xlu1 %v2532_v2  ;;  %789 = vadd.xlane.f32.xlu0 %v771_v3  ;;  %v376_v3 = vmul.f32 %v2611_v54, %v2611_v54 }
 0x156   :  { %791 = vadd.xlane.f32.xlu1 %v772_v6  ;;  %721 = vadd.xlane.f32.xlu0 %v2539_v5  ;;  %v2629_v6 = vadd.f32 %v2553_v10, %v303_v63 }
 0x158   :  { %3210 = vst [vmem:[#allocation25_spill] sm:$0xff] %v2629_v6  ;;  %v378_v24 = vmul.f32 %v2629_v6, %v2629_v6 }
 0x15a   :  { %723 = vadd.xlane.f32.xlu1 %v2546_v8  ;;  %785 = vadd.xlane.f32.xlu0 %v769_v9  ;;  %v306_v9 = vpop.f32.mrf.mxu0 }
 0x15e   :  { %787 = vadd.xlane.f32.xlu1 %v770_v13  ;;  %318 = vadd.xlane.f32.xlu0 %v2557_v12  ;;  %v2638_v13 = vadd.f32 %v2553_v10, %v306_v9  ;;  %v2088_v9 = vld [vmem:[#allocation8 + $0x10] sm:$0xff]  }
 0x160   :  { %3212 = vst [vmem:[#allocation27_spill] sm:$0xff] %v2638_v13 }
 0x162   :  { %320 = vadd.xlane.f32.xlu1 %v2566_v20  ;;  %322 = vadd.xlane.f32.xlu0 %v2563_v17 }
 0x166   :  { %324 = vadd.xlane.f32.xlu1 %v2571_v25  ;;  %382 = vadd.xlane.f32.xlu0 %v366_v26  ;;  %v379_v26 = vmul.f32 %v2638_v13, %v2638_v13 }
 0x16a   :  { %384 = vadd.xlane.f32.xlu1 %v367_v28  ;;  %386 = vadd.xlane.f32.xlu0 %v368_v29  ;;  %v381_v28 = vmul.f32 %v2643_v16, %v2643_v16 }
 0x16e   :  { %388 = vadd.xlane.f32.xlu1 %v369_v34  ;;  %326 = vadd.xlane.f32.xlu0 %v2581_v32 }
 0x172   :  { %328 = vadd.xlane.f32.xlu1 %v2590_v38  ;;  %330 = vadd.xlane.f32.xlu0 %v2587_v36 }
 0x176   :  { %332 = vadd.xlane.f32.xlu1 %v2595_v40  ;;  %390 = vadd.xlane.f32.xlu0 %v370_v42 }
 0x17a   :  { %392 = vadd.xlane.f32.xlu1 %v371_v45  ;;  %394 = vadd.xlane.f32.xlu0 %v372_v47 }
 0x17e   :  { %396 = vadd.xlane.f32.xlu1 %v373_v51  ;;  %334 = vadd.xlane.f32.xlu0 %v2605_v50 }
 0x182   :  { %336 = vadd.xlane.f32.xlu1 %v2614_v58  ;;  %338 = vadd.xlane.f32.xlu0 %v2611_v54 }
 0x186   :  { %340 = vadd.xlane.f32.xlu1 %v2619_v60  ;;  %398 = vadd.xlane.f32.xlu0 %v374_v61 }
 0x18a   :  { %400 = vadd.xlane.f32.xlu1 %v375_v1  ;;  %402 = vadd.xlane.f32.xlu0 %v376_v3  ;;  %v2086_v1 = vld [vmem:[#allocation8 + $0x20] sm:$0xff]   ;;  %v2087_v3 = vld [vmem:[#allocation8 + $0x18] sm:$0xff]  }
 0x18b   :  { %1959 = vmatprep.subr.bf16.mxu0 %v2086_v1 }
 0x18c   :  { %1960 = vmatpush3.bf16.msra.mxu0 %v2086_v1 }
 0x18d   :  { %1961 = vmatprep.subr.bf16.mxu0 %v2087_v3 }
 0x18e   :  { %404 = vadd.xlane.f32.xlu1 %v377_v7  ;;  %342 = vadd.xlane.f32.xlu0 %v2629_v6 }
 0x190   :  { %1962 = vmatpush3.bf16.msra.mxu0 %v2087_v3 }
 0x191   :  { %1963 = vmatprep.subr.bf16.mxu0 %v2088_v9 }
 0x192   :  { %344 = vadd.xlane.f32.xlu1 %v2638_v13  ;;  %346 = vadd.xlane.f32.xlu0 %v2635_v11  ;;  %v2090_v13 = vld [vmem:[#allocation8] sm:$0xff]  }
 0x194   :  { %1964 = vmatpush3.bf16.msra.mxu0 %v2088_v9 }
 0x195   :  { %1965 = vmatprep.subr.bf16.mxu0 %v2089_v48 }
 0x196   :  { %348 = vadd.xlane.f32.xlu1 %v2643_v16  ;;  %406 = vadd.xlane.f32.xlu0 %v378_v24 }
 0x198   :  { %1966 = vmatpush3.bf16.msra.mxu0 %v2089_v48 }
 0x199   :  { %1967 = vmatprep.subr.bf16.mxu0 %v2090_v13 }
 0x19a   :  { %408 = vadd.xlane.f32.xlu1 %v379_v26  ;;  %410 = vadd.xlane.f32.xlu0 %v380_v27 }
 0x19c   :  { %1968 = vmatpush3.bf16.msra.mxu0 %v2090_v13 }
 0x19e   :  { %412 = vadd.xlane.f32.xlu1 %v381_v28 }
 0x19f   :  { %1970 = vmatmul.mubr.bf16.vlgmr.msra.gmra.mxu0 %v2412_v14 }
 0x1a0   :  { %1973 = vmatprep.mubr.bf16.mxu0 %v2414_v15 }
 0x1a7   :  { %v2654_v10 = vpop.xlane.xlu0 %733  ;;  %1974 = vmatmul.mubr.bf16.gmra.mxu0 %v2418_v18 }
 0x1a8   :  { %1977 = vmatprep.mubr.bf16.mxu0 %v2420_v19 }
 0x1ab   :  { %v2656_v29 = vpop.xlane.xlu0 %797  ;;  %v2658_v31 = vpop.xlane.xlu1 %735 }
 0x1af   :  { %v2660_v34 = vpop.xlane.xlu1 %799  ;;  %v742_v35 = vpop.xlane.xlu0 %741  ;;  %1978 = vmatmul.mubr.bf16.gmra.mxu0 %v2424_v21 }
 0x1b0   :  { %v2686_v36 = vmul.f32 0.03125, %v742_v35  ;;  %1981 = vmatprep.mubr.bf16.mxu0 %v2426_v22 }
 0x1b2   :  { %v843_v35 = vmul.f32 %v2686_v36, %v2686_v36 }
 0x1b3   :  { %v806_v42 = vpop.xlane.xlu0 %805  ;;  %v744_v44 = vpop.xlane.xlu1 %743 }
 0x1b4   :  { %v2678_v1 = vmul.f32 0.03125, %v744_v44 }
 0x1b6   :  { %v844_v44 = vmul.f32 %v2678_v1, %v2678_v1  ;;  %v876_v22 = vsub.f32 %v2470_v41, %v2678_v1 }
 0x1b7   :  { %v808_v45 = vpop.xlane.xlu1 %807  ;;  %v2662_v47 = vpop.xlane.xlu0 %737  ;;  %1982 = vmatmul.mubr.bf16.gmra.mxu0 %v2432_v23 }
 0x1b8   :  { %v828_v6 = vmul.f32 0.03125, %v808_v45  ;;  %v2705_v13 = vmul.f32 0.03125, %v2662_v47 }
 0x1ba   :  { %v860_v45 = vsub.f32 %v828_v6, %v844_v44  ;;  %v841_v15 = vmul.f32 %v2705_v13, %v2705_v13 }
 0x1bb   :  { %v740_v51 = vpop.xlane.xlu1 %739  ;;  %v2664_v52 = vpop.xlane.xlu0 %801 }
 0x1bc   :  { %v825_v14 = vmul.f32 0.03125, %v2664_v52 }
 0x1bf   :  { %v804_v61 = vpop.xlane.xlu1 %803  ;;  %v750_v63 = vpop.xlane.xlu0 %749 }
 0x1c0   :  { %v2666_v24 = vmul.f32 0.03125, %v750_v63 }
 0x1c2   :  { %v847_v28 = vmul.f32 %v2666_v24, %v2666_v24  ;;  %v879_v19 = vsub.f32 %v2487_v49, %v2666_v24 }
 0x1c3   :  { %v814_v4 = vpop.xlane.xlu1 %813  ;;  %v746_v7 = vpop.xlane.xlu0 %745 }
 0x1c4   :  { %v831_v39 = vmul.f32 0.03125, %v814_v4  ;;  %v2682_v60 = vmul.f32 0.03125, %v746_v7 }
 0x1c6   :  { %v863_v63 = vsub.f32 %v831_v39, %v847_v28  ;;  %v827_v28 = vmul.f32 0.03125, %v806_v42  ;;  %v845_v7 = vmul.f32 %v2682_v60, %v2682_v60 }
 0x1c7   :  { %v752_v26 = vpop.xlane.xlu0 %751  ;;  %v2668_v27 = vpop.xlane.xlu1 %731 }
 0x1c8   :  { %v2676_v11 = vmul.f32 0.03125, %v752_v26  ;;  %v895_v9 = vadd.f32 1e-05, %v863_v63  ;;  %v859_v63 = vsub.f32 %v827_v28, %v843_v35  ;;  %v2719_v35 = vmul.f32 0.03125, %v2658_v31 }
 0x1ca   :  { %v848_v4 = vmul.f32 %v2676_v11, %v2676_v11  ;;  %2091 = vrsqrt.f32 %v895_v9  ;;  %v891_v28 = vadd.f32 1e-05, %v859_v63  ;;  %v880_v31 = vsub.f32 %v2503_v56, %v2676_v11 }
 0x1cb   :  { %v2672_v59 = vpop.xlane.xlu1 %795  ;;  %v2674_v16 = vpop.xlane.xlu0 %729  ;;  %v840_v18 = vmul.f32 %v2719_v35, %v2719_v35 }
 0x1cf   :  { %v816_v3 = vpop.xlane.xlu1 %815  ;;  %v2680_v54 = vpop.xlane.xlu0 %793 }
 0x1d0   :  { %v832_v50 = vmul.f32 0.03125, %v816_v3 }
 0x1d2   :  { %v864_v26 = vsub.f32 %v832_v50, %v848_v4  ;;  %v2696_v50 = vmul.f32 0.03125, %v740_v51  ;;  %v892_v4 = vadd.f32 1e-05, %v860_v45  ;;  %v526_v51 = vlaneseq }
 0x1d3   :  { %v748_v39 = vpop.xlane.xlu1 %747  ;;  %v810_v58 = vpop.xlane.xlu0 %809 }
 0x1d4   :  { %v896_v40 = vadd.f32 1e-05, %v864_v26  ;;  %v2692_v32 = vmul.f32 0.03125, %v748_v39  ;;  %v829_v3 = vmul.f32 0.03125, %v810_v58  ;;  %v842_v39 = vmul.f32 %v2696_v50, %v2696_v50 }
 0x1d5   :  { %v874_v23 = vsub.f32 %v2482_v46, %v2696_v50 }
 0x1d6   :  { %2093 = vrsqrt.f32 %v896_v40  ;;  %v861_v48 = vsub.f32 %v829_v3, %v845_v7  ;;  %v846_v44 = vmul.f32 %v2692_v32, %v2692_v32  ;;  %v826_v40 = vmul.f32 0.03125, %v804_v61 }
 0x1d7   :  { %v812_v6 = vpop.xlane.xlu1 %811  ;;  %v2698_v42 = vpop.xlane.xlu0 %725  ;;  %2095 = vrsqrt.f32 %v892_v4  ;;  %v2716_v61 = vand.u32 127, %v526_v51  ;;  %v824_v4 = vmul.f32 0.03125, %v2660_v34  ;;  %v878_v21 = vsub.f32 %v2518_v62, %v2692_v32 }
 0x1d8   :  { %v830_v58 = vmul.f32 0.03125, %v812_v6  ;;  %v893_v9 = vadd.f32 1e-05, %v861_v48  ;;  %v858_v47 = vsub.f32 %v826_v40, %v842_v39  ;;  %v857_v48 = vsub.f32 %v825_v14, %v841_v15 }
 0x1d9   :  { %v2728_v6 = vmul.f32 0.03125, %v2654_v10  ;;  %vm528_vm0 = vcmp.lt.s32.totalorder %v2716_v61, 32  ;;  %v856_v11 = vsub.f32 %v824_v4, %v840_v18  ;;  %v2756_v15 = vmul.f32 0.03125, %v2668_v27 }
 0x1da   :  { %v862_v26 = vsub.f32 %v830_v58, %v846_v44  ;;  %2097 = vrsqrt.f32 %v893_v9  ;;  %v890_v44 = vadd.f32 1e-05, %v858_v47  ;;  %v2092_v58 = vpop.eup %2091  ;;  %v823_v9 = vmul.f32 0.03125, %v2656_v29  ;;  %vm2748_vm1 = vmpackc.low %vm528_vm0, %vm528_vm0 }
 0x1db   :  { %v2710_v45 = vpop.xlane.xlu1 %727  ;;  %v2712_v7 = vpop.xlane.xlu0 %789  ;;  %v839_v56 = vmul.f32 %v2728_v6, %v2728_v6  ;;  %v2746_v29 = vmul.f32 0.03125, %v2674_v16  ;;  %v821_v47 = vmul.f32 0.03125, %v2680_v54  ;;  %v838_v18 = vmul.f32 %v2756_v15, %v2756_v15 }
 0x1dc   :  { %v894_v3 = vadd.f32 1e-05, %v862_v26  ;;  %v889_v26 = vadd.f32 1e-05, %v857_v48  ;;  %v888_v48 = vadd.f32 1e-05, %v856_v11 }
 0x1dd   :  { %v855_v14 = vsub.f32 %v823_v9, %v839_v56  ;;  %vm1226_vm2 = vcmp.lt.s32.totalorder %v2716_v61, 8 }
 0x1de   :  { %2099 = vrsqrt.f32 %v894_v3 }
 0x1df   :  { %2101 = vrsqrt.f32 %v891_v28  ;;  %v2721_v52 = vpop.xlane.xlu1 %791  ;;  %v2723_v63 = vpop.xlane.xlu0 %721  ;;  %v927_v28 = vmul.f32 %v2092_v58, %v879_v19  ;;  %v837_v58 = vmul.f32 %v2746_v29, %v2746_v29  ;;  %v887_v27 = vadd.f32 1e-05, %v855_v14 }
 0x1e0   :  { %2103 = vrsqrt.f32 %v890_v44  ;;  %v822_v44 = vmul.f32 0.03125, %v2672_v59  ;;  %v875_v19 = vsub.f32 %v2464_v37, %v2686_v36  ;;  %v2792_v36 = vmul.f32 0.03125, %v2698_v42 }
 0x1e1   :  { %2105 = vrsqrt.f32 %v889_v26  ;;  %v853_v26 = vsub.f32 %v821_v47, %v837_v58  ;;  %v819_v42 = vmul.f32 0.03125, %v2712_v7 }
 0x1e2   :  { %2107 = vrsqrt.f32 %v888_v48  ;;  %v854_v1 = vsub.f32 %v822_v44, %v838_v18  ;;  %v835_v50 = vmul.f32 %v2792_v36, %v2792_v36 }
 0x1e3   :  { %v2094_v40 = vpop.eup %2093  ;;  %v2739_v10 = vpop.xlane.xlu1 %723  ;;  %2109 = vrsqrt.f32 %v887_v27  ;;  %v885_v14 = vadd.f32 1e-05, %v853_v26 }
 0x1e4   :  { %v2741_v34 = vpop.xlane.xlu0 %785  ;;  %v928_v51 = vmul.f32 %v2094_v40, %v880_v31  ;;  %v2096_v16 = vpop.eup %2095  ;;  %v877_v31 = vsub.f32 %v2496_v53, %v2682_v60  ;;  %v2782_v53 = vmul.f32 0.03125, %v2710_v45  ;;  %v820_v45 = vmul.f32 0.03125, %v2721_v52 }
 0x1e5   :  { %v924_v41 = vmul.f32 %v2096_v16, %v876_v22  ;;  %v886_v48 = vadd.f32 1e-05, %v854_v1  ;;  %2111 = vrsqrt.f32 %v885_v14  ;;  %v2815_v18 = vmul.f32 0.03125, %v2739_v10 }
 0x1e6   :  { %v1683_v3 = vpack.c.bf16 %v928_v51, %v927_v28  ;;  %v836_v44 = vmul.f32 %v2782_v53, %v2782_v53  ;;  %v872_v10 = vsub.f32 %v2458_v33, %v2719_v35 }
 0x1e7   :  { %v2752_v49 = vpop.xlane.xlu1 %787  ;;  %v2098_v4 = vpop.eup %2097  ;;  %2113 = vrsqrt.f32 %v886_v48 }
 0x1e8   :  { %v319_v24 = vpop.xlane.xlu0 %318  ;;  %1985 = vmatprep.subr.msk.bf16.mxu1 %vm2748_vm1, %v1683_v3  ;;  %v925_v51 = vmul.f32 %v2098_v4, %v877_v31  ;;  %v852_v22 = vsub.f32 %v820_v45, %v836_v44 }
 0x1e9   :  { %1986 = vmatpush3.bf16.xpose.msk.msra.mxu1 %vm2748_vm1, %v1683_v3  ;;  %v2777_v62 = vmul.f32 0.03125, %v319_v24 }
 0x1eb   :  { %v2100_v54 = vpop.eup %2099  ;;  %v321_v40 = vpop.xlane.xlu1 %320  ;;  %v430_v24 = vmul.f32 %v2777_v62, %v2777_v62 }
 0x1ec   :  { %v2773_v9 = vpop.xlane.xlu0 %322  ;;  %v2102_v59 = vpop.eup %2101  ;;  %v926_v32 = vmul.f32 %v2100_v54, %v878_v21  ;;  %v2789_v3 = vmul.f32 0.03125, %v321_v40  ;;  %v873_v54 = vsub.f32 %v2476_v43, %v2705_v13  ;;  %v2818_v13 = vmul.f32 0.03125, %v2723_v63 }
 0x1ed   :  { %v923_v28 = vmul.f32 %v2102_v59, %v875_v19  ;;  %v2104_v16 = vpop.eup %2103  ;;  %v851_v59 = vsub.f32 %v819_v42, %v835_v50  ;;  %v834_v63 = vmul.f32 %v2815_v18, %v2815_v18  ;;  %v869_v42 = vsub.f32 %v2508_v57, %v2746_v29 }
 0x1ee   :  { %v1686_v11 = vpack.c.bf16 %v926_v32, %v925_v51  ;;  %v2106_v21 = vpop.eup %2105  ;;  %v431_v27 = vmul.f32 %v2789_v3, %v2789_v3  ;;  %v922_v31 = vmul.f32 %v2104_v16, %v874_v23  ;;  %v884_v51 = vadd.f32 1e-05, %v852_v22 }
 0x1ef   :  { %v2784_v60 = vpop.xlane.xlu1 %324  ;;  %v1689_v47 = vpack.c.bf16 %v924_v41, %v923_v28  ;;  %v921_v43 = vmul.f32 %v2106_v21, %v873_v54  ;;  %v818_v41 = vmul.f32 0.03125, %v2752_v49  ;;  %v883_v28 = vadd.f32 1e-05, %v851_v59 }
 0x1f0   :  { %v383_v56 = vpop.xlane.xlu0 %382  ;;  %1987 = vmatprep.subr.msk.bf16.mxu1 %vm2748_vm1, %v1686_v11  ;;  %v870_v54 = vsub.f32 %v2500_v55, %v2756_v15  ;;  %v2850_v29 = vmul.f32 0.03125, %v2773_v9  ;;  %v463_v55 = vsub.f32 %v2566_v20, %v2789_v3 }
 0x1f1   :  { %v414_v37 = vmul.f32 0.03125, %v383_v56  ;;  %1988 = vmatpush3.bf16.xpose.msk.msra.mxu1 %vm2748_vm1, %v1686_v11  ;;  %v1692_v1 = vpack.c.bf16 %v922_v31, %v921_v43  ;;  %v2108_v56 = vpop.eup %2107  ;;  %v817_v11 = vmul.f32 0.03125, %v2741_v34  ;;  %v833_v34 = vmul.f32 %v2818_v13, %v2818_v13 }
 0x1f2   :  { %1989 = vmatprep.subr.msk.bf16.mxu1 %vm2748_vm1, %v1689_v47  ;;  %v850_v45 = vsub.f32 %v818_v41, %v834_v63  ;;  %v920_v33 = vmul.f32 %v2108_v56, %v872_v10  ;;  %v432_v20 = vmul.f32 %v2850_v29, %v2850_v29 }
 0x1f3   :  { %v446_v4 = vsub.f32 %v414_v37, %v430_v24  ;;  %v385_v52 = vpop.xlane.xlu1 %384  ;;  %v2110_v24 = vpop.eup %2109  ;;  %v871_v37 = vsub.f32 %v2454_v30, %v2728_v6  ;;  %v849_v35 = vsub.f32 %v817_v11, %v833_v34 }
 0x1f4   :  { %v2806_v58 = vpop.xlane.xlu0 %386  ;;  %v415_v46 = vmul.f32 0.03125, %v385_v52  ;;  %v882_v23 = vadd.f32 1e-05, %v850_v45 }
 0x1f5   :  { %v478_v7 = vadd.f32 1e-05, %v446_v4  ;;  %v919_v48 = vmul.f32 %v2110_v24, %v871_v37  ;;  %v2112_v4 = vpop.eup %2111  ;;  %v881_v52 = vadd.f32 1e-05, %v849_v35  ;;  %v416_v9 = vmul.f32 0.03125, %v2806_v58 }
 0x1f6   :  { %v447_v40 = vsub.f32 %v415_v46, %v431_v27  ;;  %v2114_v21 = vpop.eup %2113  ;;  %v2845_v27 = vmul.f32 0.03125, %v2784_v60  ;;  %v917_v46 = vmul.f32 %v2112_v4, %v869_v42  ;;  %v867_v24 = vsub.f32 %v2525_v0, %v2792_v36 }
 0x1f7   :  { %v389_v26 = vpop.xlane.xlu1 %388  ;;  %2115 = vrsqrt.f32 %v478_v7  ;;  %v1695_v44 = vpack.c.bf16 %v920_v33, %v919_v48  ;;  %v918_v7 = vmul.f32 %v2114_v21, %v870_v54 }
 0x1f8   :  { %v327_v32 = vpop.xlane.xlu0 %326  ;;  %v479_v19 = vadd.f32 1e-05, %v447_v40  ;;  %v417_v22 = vmul.f32 0.03125, %v389_v26  ;;  %v462_v40 = vsub.f32 %v2557_v12, %v2777_v62 }
 0x1f9   :  { %1990 = vmatpush3.bf16.xpose.msk.msra.mxu1 %vm2748_vm1, %v1689_v47  ;;  %v2856_v15 = vmul.f32 0.03125, %v327_v32  ;;  %v868_v32 = vsub.f32 %v2532_v2, %v2782_v53 }
 0x1fa   :  { %2117 = vrsqrt.f32 %v479_v19  ;;  %1991 = vmatprep.subr.msk.bf16.mxu1 %vm2748_vm1, %v1692_v1  ;;  %v433_v19 = vmul.f32 %v2845_v27, %v2845_v27 }
 0x1fb   :  { %v329_v49 = vpop.xlane.xlu1 %328  ;;  %2119 = vrsqrt.f32 %v884_v51  ;;  %v1698_v51 = vpack.c.bf16 %v918_v7, %v917_v46  ;;  %v434_v58 = vmul.f32 %v2856_v15, %v2856_v15  ;;  %v866_v46 = vsub.f32 %v2546_v8, %v2815_v18 }
 0x1fc   :  { %v2830_v14 = vpop.xlane.xlu0 %330  ;;  %2121 = vrsqrt.f32 %v883_v28  ;;  %v2847_v50 = vmul.f32 0.03125, %v329_v49  ;;  %v449_v3 = vsub.f32 %v417_v22, %v433_v19  ;;  %v448_v49 = vsub.f32 %v416_v9, %v432_v20 }
 0x1fd   :  { %2123 = vrsqrt.f32 %v882_v23  ;;  %v2880_v45 = vmul.f32 0.03125, %v2830_v14  ;;  %v865_v14 = vsub.f32 %v2539_v5, %v2818_v13 }
 0x1fe   :  { %2125 = vrsqrt.f32 %v881_v52  ;;  %v435_v26 = vmul.f32 %v2847_v50, %v2847_v50  ;;  %v481_v53 = vadd.f32 1e-05, %v449_v3  ;;  %v480_v23 = vadd.f32 1e-05, %v448_v49 }
 0x1ff   :  { %v333_v47 = vpop.xlane.xlu1 %332 }
 0x200   :  { %v391_v16 = vpop.xlane.xlu0 %390  ;;  %v2875_v34 = vmul.f32 0.03125, %v333_v47  ;;  %2127 = vrsqrt.f32 %v481_v53 }
 0x201   :  { %1992 = vmatpush3.bf16.xpose.msk.msra.mxu1 %vm2748_vm1, %v1692_v1  ;;  %v418_v41 = vmul.f32 0.03125, %v391_v16 }
 0x202   :  { %1993 = vmatprep.subr.msk.bf16.mxu1 %vm2748_vm1, %v1695_v44  ;;  %v437_v36 = vmul.f32 %v2875_v34, %v2875_v34 }
 0x203   :  { %v393_v30 = vpop.xlane.xlu1 %392  ;;  %v450_v37 = vsub.f32 %v418_v41, %v434_v58 }
 0x204   :  { %v395_v6 = vpop.xlane.xlu0 %394  ;;  %v2116_v57 = vpop.eup %2115  ;;  %v419_v60 = vmul.f32 0.03125, %v393_v30 }
 0x205   :  { %v510_v1 = vmul.f32 %v2116_v57, %v462_v40  ;;  %v482_v47 = vadd.f32 1e-05, %v450_v37  ;;  %v420_v42 = vmul.f32 0.03125, %v395_v6  ;;  %v436_v57 = vmul.f32 %v2880_v45, %v2880_v45 }
 0x206   :  { %v451_v56 = vsub.f32 %v419_v60, %v435_v26 }
 0x207   :  { %v2118_v31 = vpop.eup %2117  ;;  %v397_v59 = vpop.xlane.xlu1 %396  ;;  %v452_v8 = vsub.f32 %v420_v42, %v436_v57  ;;  %v464_v42 = vsub.f32 %v2563_v17, %v2850_v29 }
 0x208   :  { %v335_v43 = vpop.xlane.xlu0 %334  ;;  %v511_v12 = vmul.f32 %v2118_v31, %v463_v55  ;;  %v2120_v62 = vpop.eup %2119  ;;  %v483_v33 = vadd.f32 1e-05, %v451_v56  ;;  %v421_v35 = vmul.f32 0.03125, %v397_v59 }
 0x209   :  { %1994 = vmatpush3.bf16.xpose.msk.msra.mxu1 %vm2748_vm1, %v1695_v44  ;;  %v2122_v63 = vpop.eup %2121  ;;  %v916_v2 = vmul.f32 %v2120_v62, %v868_v32  ;;  %v2882_v44 = vmul.f32 0.03125, %v335_v43 }
 0x20a   :  { %1995 = vmatprep.subr.msk.bf16.mxu1 %vm2748_vm1, %v1698_v51  ;;  %v1707_v28 = vpack.c.bf16 %v511_v12, %v510_v1  ;;  %v915_v4 = vmul.f32 %v2122_v63, %v867_v24  ;;  %v2124_v21 = vpop.eup %2123  ;;  %2129 = vrsqrt.f32 %v483_v33  ;;  %v453_v22 = vsub.f32 %v421_v35, %v437_v36 }
 0x20b   :  { %v337_v11 = vpop.xlane.xlu1 %336  ;;  %v2126_v54 = vpop.eup %2125  ;;  %2131 = vrsqrt.f32 %v480_v23  ;;  %v438_v5 = vmul.f32 %v2882_v44, %v2882_v44  ;;  %v914_v40 = vmul.f32 %v2124_v21, %v866_v46  ;;  %v484_v1 = vadd.f32 1e-05, %v452_v8  ;;  %v3216_v21 = vld [vmem:[#allocation18_spill] sm:$0xff] }
 0x20c   :  { %v339_v10 = vpop.xlane.xlu0 %338  ;;  %2001 = vmatprep.mubr.msk.bf16.mxu1 %vm2748_vm1, %v1707_v28  ;;  %v2884_v0 = vmul.f32 0.03125, %v337_v11  ;;  %v1701_v52 = vpack.c.bf16 %v916_v2, %v915_v4  ;;  %2133 = vrsqrt.f32 %v482_v47  ;;  %v485_v59 = vadd.f32 1e-05, %v453_v22 }
 0x20d   :  { %v2904_v43 = vmul.f32 0.03125, %v339_v10  ;;  %v2128_v63 = vpop.eup %2127  ;;  %v465_v33 = vsub.f32 %v2571_v25, %v2845_v27  ;;  %v467_v23 = vsub.f32 %v2590_v38, %v2847_v50 }
 0x20e   :  { %v439_v13 = vmul.f32 %v2884_v0, %v2884_v0  ;;  %2135 = vrsqrt.f32 %v485_v59 }
 0x20f   :  { %v341_v16 = vpop.xlane.xlu1 %340  ;;  %v440_v32 = vmul.f32 %v2904_v43, %v2904_v43 }
 0x210   :  { %v399_v48 = vpop.xlane.xlu0 %398  ;;  %v2902_v18 = vmul.f32 0.03125, %v341_v16 }
 0x211   :  { %v422_v30 = vmul.f32 0.03125, %v399_v48  ;;  %1996 = vmatpush3.bf16.xpose.msk.msra.mxu1 %vm2748_vm1, %v1698_v51  ;;  %v913_v51 = vmul.f32 %v2126_v54, %v865_v14  ;;  %v466_v14 = vsub.f32 %v3216_v21, %v2856_v15 }
 0x212   :  { %1997 = vmatprep.subr.msk.bf16.mxu1 %vm2748_vm1, %v1701_v52  ;;  %v441_v12 = vmul.f32 %v2902_v18, %v2902_v18 }
 0x213   :  { %v401_v6 = vpop.xlane.xlu1 %400  ;;  %v454_v55 = vsub.f32 %v422_v30, %v438_v5  ;;  %v1704_v20 = vpack.c.bf16 %v914_v40, %v913_v51 }
 0x214   :  { %v403_v7 = vpop.xlane.xlu0 %402  ;;  %v423_v31 = vmul.f32 0.03125, %v401_v6 }
 0x215   :  { %v424_v62 = vmul.f32 0.03125, %v403_v7  ;;  %v486_v3 = vadd.f32 1e-05, %v454_v55 }
 0x216   :  { %v455_v60 = vsub.f32 %v423_v31, %v439_v13 }
 0x217   :  { %v405_v19 = vpop.xlane.xlu1 %404  ;;  %v456_v28 = vsub.f32 %v424_v62, %v440_v32  ;;  %v2130_v53 = vpop.eup %2129 }
 0x218   :  { %v343_v9 = vpop.xlane.xlu0 %342  ;;  %v487_v26 = vadd.f32 1e-05, %v455_v60  ;;  %v425_v41 = vmul.f32 0.03125, %v405_v19  ;;  %v2132_v4 = vpop.eup %2131  ;;  %v515_v54 = vmul.f32 %v2130_v53, %v467_v23  ;;  %v3223_v23 = vld [vmem:[#allocation25_spill] sm:$0xff] }
 0x219   :  { %1998 = vmatpush3.bf16.xpose.msk.msra.mxu1 %vm2748_vm1, %v1701_v52  ;;  %v2914_v10 = vmul.f32 0.03125, %v343_v9  ;;  %v488_v36 = vadd.f32 1e-05, %v456_v28  ;;  %v2134_v47 = vpop.eup %2133  ;;  %v513_v52 = vmul.f32 %v2128_v63, %v465_v33  ;;  %v512_v15 = vmul.f32 %v2132_v4, %v464_v42  ;;  %v3217_v9 = vld [vmem:[#allocation20_spill] sm:$0xff] }
 0x21a   :  { %v457_v58 = vsub.f32 %v425_v41, %v441_v12  ;;  %1999 = vmatprep.subr.msk.bf16.mxu1 %vm2748_vm1, %v1704_v20  ;;  %2137 = vrsqrt.f32 %v487_v26  ;;  %v514_v22 = vmul.f32 %v2134_v47, %v466_v14  ;;  %v469_v51 = vsub.f32 %v3217_v9, %v2875_v34  ;;  %v3218_v41 = vld [vmem:[#allocation23_spill] sm:$0xff] }
 0x21b   :  { %v345_v56 = vpop.xlane.xlu1 %344  ;;  %2139 = vrsqrt.f32 %v484_v1  ;;  %v442_v35 = vmul.f32 %v2914_v10, %v2914_v10  ;;  %v1710_v31 = vpack.c.bf16 %v513_v52, %v512_v15  ;;  %v2136_v40 = vpop.eup %2135  ;;  %v471_v1 = vsub.f32 %v3218_v41, %v2884_v0  ;;  %v3224_v47 = vld [vmem:[#allocation27_spill] sm:$0xff] }
 0x21c   :  { %v347_v11 = vpop.xlane.xlu0 %346  ;;  %2141 = vrsqrt.f32 %v486_v3  ;;  %v489_v49 = vadd.f32 1e-05, %v457_v58  ;;  %v2916_v24 = vmul.f32 0.03125, %v345_v56  ;;  %v1713_v8 = vpack.c.bf16 %v515_v54, %v514_v22  ;;  %v3220_v58 = vld [vmem:[#allocation21_spill] sm:$0xff] }
 0x21d   :  { %v2922_v16 = vmul.f32 0.03125, %v347_v11  ;;  %v517_v32 = vmul.f32 %v2136_v40, %v469_v51  ;;  %v470_v34 = vsub.f32 %v3220_v58, %v2882_v44  ;;  %v3222_v44 = vld [vmem:[#allocation22_spill] sm:$0xff] }
 0x21e   :  { %2143 = vrsqrt.f32 %v489_v49  ;;  %v443_v27 = vmul.f32 %v2916_v24, %v2916_v24  ;;  %v472_v33 = vsub.f32 %v3222_v44, %v2904_v43  ;;  %v475_v42 = vsub.f32 %v3224_v47, %v2916_v24  ;;  %v1673_v40 = vld [vmem:[%s3189_s6] ss:$0 sm:$0xff]  ;;  %s2339_s6 = smov [#allocation11]  }
 0x21f   :  { %v349_v37 = vpop.xlane.xlu1 %348  ;;  %v444_v17 = vmul.f32 %v2922_v16, %v2922_v16  ;;  %2145 = vrsqrt.f32 %v488_v36  ;;  %v474_v36 = vsub.f32 %v3223_v23, %v2914_v10  ;;  %s1629_s27 = sshll.u32 %s2339_s6, 4  ;;  %s1630_s27 = int_to_ptr.vmem [resolvable:$true] %s1629_s27 }
 0x220   :  { %v407_v2 = vpop.xlane.xlu0 %406  ;;  %v2934_v30 = vmul.f32 0.03125, %v349_v37  ;;  %s2283_s28 = scalar_lea.vmem %s1630_s27, 1024  ;;  %p2288_p7 = scmp.lt.s32.totalorder %s1630_s27, %s1630_s27 }
 0x221   :  { %v426_v48 = vmul.f32 0.03125, %v407_v2  ;;  %2000 = vmatpush3.bf16.xpose.msk.msra.mxu1 %vm2748_vm1, %v1704_v20  ;;  %v3219_v20 = vld [vmem:[#allocation19_spill] sm:$0xff]  ;;  %v3221_v2 = vld [vmem:[#allocation24_spill] sm:$0xff]  ;;  %p2284_p6 = scmp.ne.s32.totalorder %s1630_s27, %s2283_s28  ;;  %p2289_p8 = scmp.lt.s32.totalorder %s2283_s28, %s2283_s28 }
 0x222   :  { %v445_v5 = vmul.f32 %v2934_v30, %v2934_v30  ;;  %v468_v3 = vsub.f32 %v3219_v20, %v2880_v45  ;;  %v473_v53 = vsub.f32 %v3221_v2, %v2902_v18 }
 0x223   :  { %v458_v25 = vsub.f32 %v426_v48, %v442_v35  ;;  %v409_v38 = vpop.xlane.xlu1 %408  ;;  %p2290_p9 = por %p2289_p8, %p2288_p7 }
 0x224   :  { %v411_v50 = vpop.xlane.xlu0 %410  ;;  %v427_v46 = vmul.f32 0.03125, %v409_v38  ;;  %v3226_v38 = vld [vmem:[#allocation28_spill] sm:$0xff] }
 0x225   :  { %v490_v29 = vadd.f32 1e-05, %v458_v25  ;;  %v428_v57 = vmul.f32 0.03125, %v411_v50  ;;  %v477_v50 = vsub.f32 %v3226_v38, %v2934_v30  ;;  %p2291_p10 = pnand %p2290_p9, %p2284_p6 }
 0x226   :  { %v459_v6 = vsub.f32 %v427_v46, %v443_v27  ;;  %v3225_v27 = vld [vmem:[#allocation26_spill] sm:$0xff] }
 0x227   :  { %v460_v7 = vsub.f32 %v428_v57, %v444_v17  ;;  %v413_v13 = vpop.xlane.xlu1 %412  ;;  %2147 = vrsqrt.f32 %v490_v29  ;;  %v2138_v19 = vpop.eup %2137  ;;  %v476_v43 = vsub.f32 %v3225_v27, %v2922_v16 }
 0x228   :  { %v491_v55 = vadd.f32 1e-05, %v459_v6  ;;  %v429_v59 = vmul.f32 0.03125, %v413_v13  ;;  %2002 = vmatmul.mubr.msk.bf16.vlgmr.msra.gmra.mxu1 %vm2748_vm1, %v1710_v31  ;;  %v2140_v26 = vpop.eup %2139  ;;  %v519_v11 = vmul.f32 %v2138_v19, %v471_v1 }
 0x229   :  { %v492_v60 = vadd.f32 1e-05, %v460_v7  ;;  %2005 = vmatprep.mubr.msk.bf16.mxu1 %vm2748_vm1, %v1713_v8  ;;  %v2142_v62 = vpop.eup %2141  ;;  %v516_v28 = vmul.f32 %v2140_v26, %v468_v3 }
 0x22a   :  { %2149 = vrsqrt.f32 %v491_v55  ;;  %v461_v12 = vsub.f32 %v429_v59, %v445_v5  ;;  %v518_v63 = vmul.f32 %v2142_v62, %v470_v34 }
 0x22b   :  { %2151 = vrsqrt.f32 %v492_v60  ;;  %v1716_v0 = vpack.c.bf16 %v517_v32, %v516_v28  ;;  %v2144_v49 = vpop.eup %2143 }
 0x22c   :  { %v493_v56 = vadd.f32 1e-05, %v461_v12  ;;  %v1719_v37 = vpack.c.bf16 %v519_v11, %v518_v63  ;;  %v2146_v45 = vpop.eup %2145  ;;  %v521_v35 = vmul.f32 %v2144_v49, %v473_v53 }
 0x22d   :  { %v520_v4 = vmul.f32 %v2146_v45, %v472_v33 }
 0x22e   :  { %2153 = vrsqrt.f32 %v493_v56 }
 0x22f   :  { %v1722_v52 = vpack.c.bf16 %v521_v35, %v520_v4 }
 0x230   :  { %2006 = vmatmul.mubr.msk.bf16.gmra.mxu1 %vm2748_vm1, %v1716_v0 }
 0x231   :  { %2009 = vmatprep.mubr.msk.bf16.mxu1 %vm2748_vm1, %v1719_v37 }
 0x234   :  { %v2148_v48 = vpop.eup %2147 }
 0x235   :  { %v522_v21 = vmul.f32 %v2148_v48, %v474_v36 }
 0x237   :  { %v2150_v18 = vpop.eup %2149 }
 0x238   :  { %v523_v14 = vmul.f32 %v2150_v18, %v475_v42  ;;  %v2152_v25 = vpop.eup %2151  ;;  %2010 = vmatmul.mubr.msk.bf16.gmra.mxu1 %vm2748_vm1, %v1722_v52 }
 0x239   :  { %v524_v10 = vmul.f32 %v2152_v25, %v476_v43 }
 0x23a   :  { %v1725_v54 = vpack.c.bf16 %v523_v14, %v522_v21 }
 0x23b   :  { %v2154_v17 = vpop.eup %2153 }
 0x23c   :  { %2013 = vmatprep.mubr.msk.bf16.mxu1 %vm2748_vm1, %v1725_v54  ;;  %v525_v24 = vmul.f32 %v2154_v17, %v477_v50 }
 0x23e   :  { %v1728_v29 = vpack.c.bf16 %v525_v24, %v524_v10 }
 0x240   :  { %2014 = vmatmul.mubr.msk.bf16.gmra.mxu1 %vm2748_vm1, %v1728_v29 }
 0x25f   :  { %v1971_v46 = vpop.f32.mrf.mxu0 }
 0x260   :  { %v1067_v0 = vadd.f32 %v1971_v46, %v1673_v40 }
 0x261   :  { %v1058_v57 = vpop.f32.mrf.mxu0 }
 0x262   :  { %v1059_v2 = vadd.f32 %v1673_v40, %v1058_v57 }
 0x263   :  { %v1972_v15 = vpop.f32.mrf.mxu0 }
 0x264   :  { %v1070_v49 = vadd.f32 %v1972_v15, %v1673_v40 }
 0x265   :  { %v1061_v22 = vpop.f32.mrf.mxu0 }
 0x266   :  { %v1122_v53 = vpack.c.bf16 %v1070_v49, %v1067_v0  ;;  %v1062_v45 = vadd.f32 %v1673_v40, %v1061_v22 }
 0x267   :  { %v1975_v6 = vpop.f32.mrf.mxu0 }
 0x268   :  { %v1083_v58 = vadd.f32 %v1975_v6, %v1673_v40  ;;  %v1121_v44 = vpack.c.bf16 %v1062_v45, %v1059_v2 }
 0x269   :  { %v1074_v16 = vpop.f32.mrf.mxu0 }
 0x26a   :  { %v1075_v11 = vadd.f32 %v1673_v40, %v1074_v16 }
 0x26b   :  { %v1976_v7 = vpop.f32.mrf.mxu0 }
 0x26c   :  { %v1086_v34 = vadd.f32 %v1976_v7, %v1673_v40 }
 0x26d   :  { %v1077_v5 = vpop.f32.mrf.mxu0 }
 0x26e   :  { %v1124_v28 = vpack.c.bf16 %v1086_v34, %v1083_v58  ;;  %v1078_v63 = vadd.f32 %v1673_v40, %v1077_v5 }
 0x26f   :  { %v1979_v30 = vpop.f32.mrf.mxu0 }
 0x270   :  { %v1099_v26 = vadd.f32 %v1979_v30, %v1673_v40  ;;  %v1123_v37 = vpack.c.bf16 %v1078_v63, %v1075_v11 }
 0x271   :  { %v1090_v13 = vpop.f32.mrf.mxu0 }
 0x272   :  { %v1091_v20 = vadd.f32 %v1673_v40, %v1090_v13 }
 0x273   :  { %v1980_v31 = vpop.f32.mrf.mxu0 }
 0x274   :  { %v1102_v41 = vadd.f32 %v1980_v31, %v1673_v40 }
 0x275   :  { %v1093_v8 = vpop.f32.mrf.mxu0 }
 0x276   :  { %v1126_v3 = vpack.c.bf16 %v1102_v41, %v1099_v26  ;;  %v1094_v32 = vadd.f32 %v1673_v40, %v1093_v8 }
 0x277   :  { %v1983_v55 = vpop.f32.mrf.mxu0 }
 0x278   :  { %v1115_v39 = vadd.f32 %v1983_v55, %v1673_v40  ;;  %v1125_v56 = vpack.c.bf16 %v1094_v32, %v1091_v20 }
 0x279   :  { %v1106_v60 = vpop.f32.mrf.mxu0 }
 0x27a   :  { %v1107_v19 = vadd.f32 %v1673_v40, %v1106_v60 }
 0x27b   :  { %v1984_v59 = vpop.f32.mrf.mxu0 }
 0x27c   :  { %v1118_v9 = vadd.f32 %v1984_v59, %v1673_v40 }
 0x27d   :  { %v1109_v51 = vpop.f32.mrf.mxu0 }
 0x27e   :  { %v1128_v1 = vpack.c.bf16 %v1118_v9, %v1115_v39  ;;  %v1110_v12 = vadd.f32 %v1673_v40, %v1109_v51 }
 0x280   :  { %v1127_v62 = vpack.c.bf16 %v1110_v12, %v1107_v19  ;;  %2017 = vmatprep.subr.bf16.mxu0 %v1128_v1 }
 0x281   :  { %2018 = vmatpush3.bf16.msra.mxu0 %v1128_v1 }
 0x282   :  { %2019 = vmatprep.subr.bf16.mxu0 %v1127_v62 }
 0x285   :  { %2020 = vmatpush3.bf16.msra.mxu0 %v1127_v62 }
 0x286   :  { %2021 = vmatprep.subr.bf16.mxu0 %v1126_v3 }
 0x289   :  { %2022 = vmatpush3.bf16.msra.mxu0 %v1126_v3 }
 0x28a   :  { %2023 = vmatprep.subr.bf16.mxu0 %v1125_v56 }
 0x28d   :  { %2024 = vmatpush3.bf16.msra.mxu0 %v1125_v56 }
 0x28e   :  { %2025 = vmatprep.subr.bf16.mxu0 %v1124_v28 }
 0x291   :  { %2026 = vmatpush3.bf16.msra.mxu0 %v1124_v28 }
 0x292   :  { %2027 = vmatprep.subr.bf16.mxu0 %v1123_v37 }
 0x295   :  { %2028 = vmatpush3.bf16.msra.mxu0 %v1123_v37 }
 0x296   :  { %2029 = vmatprep.subr.bf16.mxu0 %v1122_v53 }
 0x299   :  { %2030 = vmatpush3.bf16.msra.mxu0 %v1122_v53 }
 0x29a   :  { %2031 = vmatprep.subr.bf16.mxu0 %v1121_v44 }
 0x29d   :  { %2032 = vmatpush3.bf16.msra.mxu0 %v1121_v44 }
 0x2e8   :  { %v2003_v33 = vpop.f32.mrf.mxu1 }
 0x2e9   :  { %v1229_v36 = vsel %vm1226_vm2, %v2003_v33, -1e+30 }
 0x2ea   :  { %v1163_v35 = vpop.f32.mrf.mxu1 }
 0x2eb   :  { %v1227_v48 = vsel %vm1226_vm2, %v1163_v35, -1e+30 }
 0x2ec   :  { %1243 = vmax.xlane.f32.xlu0 %v1227_v48  ;;  %v2004_v4 = vpop.f32.mrf.mxu1 }
 0x2ed   :  { %v1230_v52 = vsel %vm1226_vm2, %v2004_v4, -1e+30 }
 0x2ee   :  { %v1166_v23 = vpop.f32.mrf.mxu1 }
 0x2ef   :  { %v1228_v47 = vsel %vm1226_vm2, %v1166_v23, -1e+30 }
 0x2f0   :  { %1247 = vmax.xlane.f32.xlu0 %v1229_v36  ;;  %1245 = vmax.xlane.f32.xlu1 %v1228_v47  ;;  %v2007_v42 = vpop.f32.mrf.mxu1 }
 0x2f1   :  { %v1233_v27 = vsel %vm1226_vm2, %v2007_v42, -1e+30 }
 0x2f2   :  { %v1179_v18 = vpop.f32.mrf.mxu1 }
 0x2f3   :  { %v1231_v21 = vsel %vm1226_vm2, %v1179_v18, -1e+30 }
 0x2f4   :  { %1249 = vmax.xlane.f32.xlu1 %v1230_v52  ;;  %1251 = vmax.xlane.f32.xlu0 %v1231_v21  ;;  %v2008_v14 = vpop.f32.mrf.mxu1 }
 0x2f5   :  { %v1234_v54 = vsel %vm1226_vm2, %v2008_v14, -1e+30 }
 0x2f6   :  { %v1182_v25 = vpop.f32.mrf.mxu1 }
 0x2f7   :  { %v1232_v43 = vsel %vm1226_vm2, %v1182_v25, -1e+30 }
 0x2f8   :  { %1255 = vmax.xlane.f32.xlu0 %v1233_v27  ;;  %1253 = vmax.xlane.f32.xlu1 %v1232_v43  ;;  %v2011_v38 = vpop.f32.mrf.mxu1 }
 0x2f9   :  { %v1237_v29 = vsel %vm1226_vm2, %v2011_v38, -1e+30 }
 0x2fa   :  { %v1195_v50 = vpop.f32.mrf.mxu1 }
 0x2fb   :  { %v1235_v17 = vsel %vm1226_vm2, %v1195_v50, -1e+30 }
 0x2fc   :  { %1257 = vmax.xlane.f32.xlu1 %v1234_v54  ;;  %1259 = vmax.xlane.f32.xlu0 %v1235_v17  ;;  %v2012_v10 = vpop.f32.mrf.mxu1 }
 0x2fd   :  { %v1238_v22 = vsel %vm1226_vm2, %v2012_v10, -1e+30 }
 0x2fe   :  { %v1198_v24 = vpop.f32.mrf.mxu1 }
 0x2ff   :  { %v1236_v46 = vsel %vm1226_vm2, %v1198_v24, -1e+30 }
 0x300   :  { %1263 = vmax.xlane.f32.xlu0 %v1237_v29  ;;  %1261 = vmax.xlane.f32.xlu1 %v1236_v46  ;;  %v2015_v57 = vpop.f32.mrf.mxu1 }
 0x301   :  { %v3009_v5 = vsel %vm1226_vm2, %v2015_v57, -1e+30 }
 0x302   :  { %v1211_v15 = vpop.f32.mrf.mxu1 }
 0x303   :  { %v3004_v6 = vsel %vm1226_vm2, %v1211_v15, -1e+30 }
 0x304   :  { %1265 = vmax.xlane.f32.xlu1 %v1238_v22  ;;  %1267 = vmax.xlane.f32.xlu0 %v3004_v6  ;;  %v2016_v16 = vpop.f32.mrf.mxu1 }
 0x305   :  { %v3016_v13 = vsel %vm1226_vm2, %v2016_v16, -1e+30 }
 0x306   :  { %v1214_v7 = vpop.f32.mrf.mxu1 }
 0x307   :  { %v1240_v30 = vsel %vm1226_vm2, %v1214_v7, -1e+30 }
 0x308   :  { %1271 = vmax.xlane.f32.xlu0 %v3009_v5  ;;  %1269 = vmax.xlane.f32.xlu1 %v1240_v30 }
 0x30c   :  { %1273 = vmax.xlane.f32.xlu1 %v3016_v13 }
 0x375   :  { %v1244_v31 = vpop.xlane.xlu0 %1243 }
 0x376   :  { %v1275_v55 = vsub.f32 %v1227_v48, %v1244_v31 }
 0x379   :  { %v1246_v8 = vpop.xlane.xlu1 %1245  ;;  %v1248_v40 = vpop.xlane.xlu0 %1247 }
 0x37a   :  { %v1276_v60 = vsub.f32 %v1228_v47, %v1246_v8  ;;  %v1277_v51 = vsub.f32 %v1229_v36, %v1248_v40 }
 0x37c   :  { %v1291_v39 = vpack.c.bf16 %v1276_v60, %v1275_v55 }
 0x37d   :  { %v1250_v59 = vpop.xlane.xlu1 %1249  ;;  %v1252_v19 = vpop.xlane.xlu0 %1251 }
 0x37e   :  { %v1300_v9 = vmul.bf16 1069105081, %v1291_v39  ;;  %v1278_v26 = vsub.f32 %v1230_v52, %v1250_v59  ;;  %v1279_v62 = vsub.f32 %v1231_v21, %v1252_v19 }
 0x380   :  { %2155 = vpow.bf16 %v1300_v9  ;;  %v1292_v41 = vpack.c.bf16 %v1278_v26, %v1277_v51 }
 0x381   :  { %v1254_v1 = vpop.xlane.xlu1 %1253  ;;  %v1256_v12 = vpop.xlane.xlu0 %1255 }
 0x382   :  { %v1303_v61 = vmul.bf16 1069105081, %v1292_v41  ;;  %v1280_v20 = vsub.f32 %v1232_v43, %v1254_v1  ;;  %v1281_v56 = vsub.f32 %v1233_v27, %v1256_v12 }
 0x384   :  { %2157 = vpow.bf16 %v1303_v61  ;;  %v1293_v3 = vpack.c.bf16 %v1280_v20, %v1279_v62 }
 0x385   :  { %v1258_v32 = vpop.xlane.xlu1 %1257  ;;  %v1260_v58 = vpop.xlane.xlu0 %1259 }
 0x386   :  { %v1306_v34 = vmul.bf16 1069105081, %v1293_v3  ;;  %v1282_v11 = vsub.f32 %v1234_v54, %v1258_v32  ;;  %v1283_v37 = vsub.f32 %v1235_v17, %v1260_v58 }
 0x388   :  { %2159 = vpow.bf16 %v1306_v34  ;;  %v1294_v28 = vpack.c.bf16 %v1282_v11, %v1281_v56 }
 0x389   :  { %v1262_v63 = vpop.xlane.xlu1 %1261  ;;  %v1264_v0 = vpop.xlane.xlu0 %1263 }
 0x38a   :  { %v1309_v49 = vmul.bf16 1069105081, %v1294_v28  ;;  %v1284_v2 = vsub.f32 %v1236_v46, %v1262_v63  ;;  %v1285_v48 = vsub.f32 %v1237_v29, %v1264_v0 }
 0x38c   :  { %2161 = vpow.bf16 %v1309_v49  ;;  %v1295_v53 = vpack.c.bf16 %v1284_v2, %v1283_v37 }
 0x38d   :  { %v1266_v45 = vpop.xlane.xlu1 %1265  ;;  %v1268_v44 = vpop.xlane.xlu0 %1267 }
 0x38e   :  { %v3019_v33 = vpop.eup %2155  ;;  %v1312_v35 = vmul.bf16 1069105081, %v1295_v53  ;;  %v1286_v4 = vsub.f32 %v1238_v22, %v1266_v45  ;;  %v1287_v18 = vsub.f32 %v3004_v6, %v1268_v44 }
 0x38f   :  { %2033 = vmatprep.mubr.bf16.mxu0 %v3019_v33  ;;  %v1324_v10 = vunpack.c.h.bf16 %v3019_v33  ;;  %v1323_v24 = vunpack.c.l.bf16 %v3019_v33 }
 0x390   :  { %2163 = vpow.bf16 %v1312_v35  ;;  %v1296_v23 = vpack.c.bf16 %v1286_v4, %v1285_v48 }
 0x391   :  { %v1270_v36 = vpop.xlane.xlu1 %1269  ;;  %v1272_v21 = vpop.xlane.xlu0 %1271 }
 0x392   :  { %v3022_v47 = vpop.eup %2157  ;;  %v1315_v42 = vmul.bf16 1069105081, %v1296_v23  ;;  %v1288_v52 = vsub.f32 %v1240_v30, %v1270_v36  ;;  %v1289_v54 = vsub.f32 %v3009_v5, %v1272_v21 }
 0x393   :  { %2034 = vmatmul.mubr.bf16.vlgmr.msra.gmra.mxu0 %v3022_v47  ;;  %v1326_v14 = vunpack.c.h.bf16 %v3022_v47  ;;  %v1325_v25 = vunpack.c.l.bf16 %v3022_v47 }
 0x394   :  { %2165 = vpow.bf16 %v1315_v42  ;;  %v1297_v27 = vpack.c.bf16 %v1288_v52, %v1287_v18 }
 0x395   :  { %v1274_v43 = vpop.xlane.xlu1 %1273  ;;  %1345 = vadd.xlane.f32.xlu1 %v1326_v14  ;;  %1343 = vadd.xlane.f32.xlu0 %v1325_v25 }
 0x396   :  { %v3032_v38 = vpop.eup %2159  ;;  %v1318_v50 = vmul.bf16 1069105081, %v1297_v27  ;;  %v1290_v17 = vsub.f32 %v3016_v13, %v1274_v43 }
 0x397   :  { %2037 = vmatprep.mubr.bf16.mxu0 %v3032_v38  ;;  %v1328_v16 = vunpack.c.h.bf16 %v3032_v38  ;;  %v1327_v7 = vunpack.c.l.bf16 %v3032_v38 }
 0x398   :  { %2167 = vpow.bf16 %v1318_v50  ;;  %v1298_v29 = vpack.c.bf16 %v1290_v17, %v1289_v54 }
 0x399   :  { %1341 = vadd.xlane.f32.xlu1 %v1324_v10  ;;  %1339 = vadd.xlane.f32.xlu0 %v1323_v24 }
 0x39a   :  { %v3043_v46 = vpop.eup %2161  ;;  %v1321_v57 = vmul.bf16 1069105081, %v1298_v29 }
 0x39b   :  { %2038 = vmatmul.mubr.bf16.gmra.mxu0 %v3043_v46  ;;  %v1330_v15 = vunpack.c.h.bf16 %v3043_v46  ;;  %v1329_v22 = vunpack.c.l.bf16 %v3043_v46 }
 0x39c   :  { %2169 = vpow.bf16 %v1321_v57 }
 0x39d   :  { %1353 = vadd.xlane.f32.xlu1 %v1330_v15  ;;  %1351 = vadd.xlane.f32.xlu0 %v1329_v22 }
 0x39e   :  { %v3052_v6 = vpop.eup %2163 }
 0x39f   :  { %2041 = vmatprep.mubr.bf16.mxu0 %v3052_v6  ;;  %v1332_v8 = vunpack.c.h.bf16 %v3052_v6  ;;  %v1331_v40 = vunpack.c.l.bf16 %v3052_v6 }
 0x3a1   :  { %1349 = vadd.xlane.f32.xlu1 %v1328_v16  ;;  %1347 = vadd.xlane.f32.xlu0 %v1327_v7 }
 0x3a2   :  { %v3061_v5 = vpop.eup %2165 }
 0x3a3   :  { %2042 = vmatmul.mubr.bf16.gmra.mxu0 %v3061_v5  ;;  %v1334_v30 = vunpack.c.h.bf16 %v3061_v5  ;;  %v1333_v13 = vunpack.c.l.bf16 %v3061_v5 }
 0x3a5   :  { %1361 = vadd.xlane.f32.xlu1 %v1334_v30  ;;  %1359 = vadd.xlane.f32.xlu0 %v1333_v13 }
 0x3a6   :  { %v3070_v31 = vpop.eup %2167 }
 0x3a7   :  { %2045 = vmatprep.mubr.bf16.mxu0 %v3070_v31  ;;  %v1336_v60 = vunpack.c.h.bf16 %v3070_v31  ;;  %v1335_v39 = vunpack.c.l.bf16 %v3070_v31 }
 0x3a9   :  { %1357 = vadd.xlane.f32.xlu1 %v1332_v8  ;;  %1355 = vadd.xlane.f32.xlu0 %v1331_v40 }
 0x3aa   :  { %v3079_v55 = vpop.eup %2169 }
 0x3ab   :  { %2046 = vmatmul.mubr.bf16.gmra.mxu0 %v3079_v55  ;;  %v1338_v59 = vunpack.c.h.bf16 %v3079_v55  ;;  %v1337_v19 = vunpack.c.l.bf16 %v3079_v55 }
 0x3ad   :  { %1365 = vadd.xlane.f32.xlu1 %v1336_v60  ;;  %1363 = vadd.xlane.f32.xlu0 %v1335_v39 }
 0x3b1   :  { %1369 = vadd.xlane.f32.xlu1 %v1338_v59  ;;  %1367 = vadd.xlane.f32.xlu0 %v1337_v19 }
 0x41e   :  { %v1346_v9 = vpop.xlane.xlu1 %1345  ;;  %v1344_v51 = vpop.xlane.xlu0 %1343 }
 0x41f   :  { %2171 = vrcp.f32 %v1346_v9 }
 0x420   :  { %2173 = vrcp.f32 %v1344_v51 }
 0x422   :  { %v1342_v26 = vpop.xlane.xlu1 %1341  ;;  %v1340_v41 = vpop.xlane.xlu0 %1339 }
 0x423   :  { %2175 = vrcp.f32 %v1342_v26 }
 0x424   :  { %2177 = vrcp.f32 %v1340_v41 }
 0x426   :  { %v1354_v1 = vpop.xlane.xlu1 %1353  ;;  %v1352_v12 = vpop.xlane.xlu0 %1351 }
 0x427   :  { %2179 = vrcp.f32 %v1354_v1 }
 0x428   :  { %2181 = vrcp.f32 %v1352_v12 }
 0x42a   :  { %v1350_v61 = vpop.xlane.xlu1 %1349  ;;  %v1348_v62 = vpop.xlane.xlu0 %1347 }
 0x42b   :  { %2183 = vrcp.f32 %v1350_v61 }
 0x42c   :  { %v3094_v20 = vpop.eup %2171  ;;  %2185 = vrcp.f32 %v1348_v62 }
 0x42d   :  { %v3096_v3 = vpop.eup %2173  ;;  %v1390_v32 = vmul.f32 %v3094_v20, %v1326_v14 }
 0x42e   :  { %v1389_v58 = vmul.f32 %v3096_v3, %v1325_v25  ;;  %v1362_v34 = vpop.xlane.xlu1 %1361  ;;  %v1360_v56 = vpop.xlane.xlu0 %1359 }
 0x42f   :  { %2187 = vrcp.f32 %v1362_v34 }
 0x430   :  { %v3104_v11 = vpop.eup %2175  ;;  %v1770_v28 = vpack.c.bf16 %v1390_v32, %v1389_v58  ;;  %2189 = vrcp.f32 %v1360_v56 }
 0x431   :  { %v3106_v63 = vpop.eup %2177  ;;  %v1388_v0 = vmul.f32 %v3104_v11, %v1324_v10 }
 0x432   :  { %1802 = vst [vmem:[#allocation11 + $0x8] sm:$0xff] %v1770_v28   ;;  %v1387_v49 = vmul.f32 %v3106_v63, %v1323_v24  ;;  %v1358_v37 = vpop.xlane.xlu1 %1357  ;;  %v1356_v2 = vpop.xlane.xlu0 %1355 }
 0x433   :  { %2191 = vrcp.f32 %v1358_v37 }
 0x434   :  { %v3114_v53 = vpop.eup %2179  ;;  %v1765_v45 = vpack.c.bf16 %v1388_v0, %v1387_v49  ;;  %2193 = vrcp.f32 %v1356_v2 }
 0x435   :  { %v3116_v44 = vpop.eup %2181  ;;  %v1394_v35 = vmul.f32 %v3114_v53, %v1330_v15 }
 0x436   :  { %1766 = vst [vmem:[#allocation11] sm:$0xff] %v1765_v45   ;;  %v1393_v33 = vmul.f32 %v3116_v44, %v1329_v22  ;;  %v1366_v48 = vpop.xlane.xlu1 %1365  ;;  %v1364_v4 = vpop.xlane.xlu0 %1363 }
 0x437   :  { %2195 = vrcp.f32 %v1366_v48 }
 0x438   :  { %v3124_v23 = vpop.eup %2183  ;;  %v1780_v36 = vpack.c.bf16 %v1394_v35, %v1393_v33  ;;  %2197 = vrcp.f32 %v1364_v4 }
 0x439   :  { %v2186_v47 = vpop.eup %2185  ;;  %v1392_v42 = vmul.f32 %v3124_v23, %v1328_v16 }
 0x43a   :  { %1804 = vst [vmem:[#allocation11 + $0x18] sm:$0xff] %v1780_v36   ;;  %v1391_v18 = vmul.f32 %v2186_v47, %v1327_v7  ;;  %v1370_v52 = vpop.xlane.xlu1 %1369  ;;  %v1368_v21 = vpop.xlane.xlu0 %1367 }
 0x43b   :  { %2199 = vrcp.f32 %v1370_v52 }
 0x43c   :  { %v3131_v14 = vpop.eup %2187  ;;  %v1775_v25 = vpack.c.bf16 %v1392_v42, %v1391_v18  ;;  %2201 = vrcp.f32 %v1368_v21 }
 0x43d   :  { %v2190_v27 = vpop.eup %2189  ;;  %v1398_v43 = vmul.f32 %v3131_v14, %v1334_v30 }
 0x43e   :  { %1803 = vst [vmem:[#allocation11 + $0x10] sm:$0xff] %v1775_v25   ;;  %v1397_v50 = vmul.f32 %v2190_v27, %v1333_v13 }
 0x440   :  { %v3138_v54 = vpop.eup %2191  ;;  %v1790_v38 = vpack.c.bf16 %v1398_v43, %v1397_v50 }
 0x441   :  { %v2194_v17 = vpop.eup %2193  ;;  %v1396_v10 = vmul.f32 %v3138_v54, %v1332_v8 }
 0x442   :  { %1806 = vst [vmem:[#allocation11 + $0x28] sm:$0xff] %v1790_v38   ;;  %v1395_v24 = vmul.f32 %v2194_v17, %v1331_v40 }
 0x444   :  { %v3145_v29 = vpop.eup %2195  ;;  %v1785_v46 = vpack.c.bf16 %v1396_v10, %v1395_v24 }
 0x445   :  { %v3147_v57 = vpop.eup %2197  ;;  %v1400_v15 = vmul.f32 %v3145_v29, %v1336_v60 }
 0x446   :  { %1805 = vst [vmem:[#allocation11 + $0x20] sm:$0xff] %v1785_v46   ;;  %v1399_v22 = vmul.f32 %v3147_v57, %v1335_v39 }
 0x448   :  { %v3155_v16 = vpop.eup %2199  ;;  %v1795_v7 = vpack.c.bf16 %v1400_v15, %v1399_v22 }
 0x449   :  { %v2202_v5 = vpop.eup %2201  ;;  %v1402_v6 = vmul.f32 %v3155_v16, %v1338_v59 }
 0x44a   :  { %1807 = vst [vmem:[#allocation11 + $0x30] sm:$0xff] %v1795_v7   ;;  %v1401_v30 = vmul.f32 %v2202_v5, %v1337_v19 }
 0x44c   :  { %v1800_v13 = vpack.c.bf16 %v1402_v6, %v1401_v30 }
 0x44e   :  { %1808 = vst [vmem:[#allocation11 + $0x38] sm:$0xff] %v1800_v13  }
 0x44f   :  { %2294 = shalt.err (!%p2291_p10)
}
 0x450   :  { %1635 = dma.vmem_to_hbm [thread:$0]  %s1630_s27, 1024, %s3191_s8, [#allocation12], %s2335_s10, %s2335_s10, %s2336_s11  }
 0x451   :  { %s2340_s8 = smov [#allocation10]  }
 0x452   :  { %s1617_s9 = sshll.u32 %s2340_s8, 4  ;;  %s1618_s9 = int_to_ptr.vmem [resolvable:$true] %s1617_s9 }
 0x453   :  { %v2035_v31 = vpop.f32.mrf.mxu0  ;;  %s2303_s10 = scalar_lea.vmem %s1618_s9, 2048  ;;  %p2308_p12 = scmp.lt.s32.totalorder %s1618_s9, %s1618_s9 }
 0x454   :  { %v1582_v8 = vmul.f32 %v3096_v3, %v2035_v31  ;;  %p2304_p11 = scmp.ne.s32.totalorder %s1618_s9, %s2303_s10  ;;  %p2309_p13 = scmp.lt.s32.totalorder %s2303_s10, %s2303_s10 }
 0x455   :  { %v1517_v40 = vpop.f32.mrf.mxu0 }
 0x456   :  { %1598 = vst [vmem:[#allocation10 + $0x10] sm:$0xff] %v1582_v8  ;;  %v1580_v55 = vmul.f32 %v3106_v63, %v1517_v40  ;;  %p2310_p0 = por %p2309_p13, %p2308_p12 }
 0x457   :  { %v2036_v60 = vpop.f32.mrf.mxu0 }
 0x458   :  { %1596 = vst [vmem:[#allocation10] sm:$0xff] %v1580_v55  ;;  %v1583_v39 = vmul.f32 %v3094_v20, %v2036_v60  ;;  %p2311_p1 = pnand %p2310_p0, %p2304_p11 }
 0x459   :  { %v1520_v59 = vpop.f32.mrf.mxu0 }
 0x45a   :  { %1599 = vst [vmem:[#allocation10 + $0x18] sm:$0xff] %v1583_v39  ;;  %v1581_v19 = vmul.f32 %v3104_v11, %v1520_v59 }
 0x45b   :  { %v2039_v9 = vpop.f32.mrf.mxu0 }
 0x45c   :  { %1597 = vst [vmem:[#allocation10 + $0x8] sm:$0xff] %v1581_v19  ;;  %v1586_v51 = vmul.f32 %v3116_v44, %v2039_v9 }
 0x45d   :  { %v1533_v26 = vpop.f32.mrf.mxu0 }
 0x45e   :  { %1602 = vst [vmem:[#allocation10 + $0x30] sm:$0xff] %v1586_v51  ;;  %v1584_v41 = vmul.f32 %v2186_v47, %v1533_v26 }
 0x45f   :  { %v2040_v1 = vpop.f32.mrf.mxu0 }
 0x460   :  { %1600 = vst [vmem:[#allocation10 + $0x20] sm:$0xff] %v1584_v41  ;;  %v1587_v12 = vmul.f32 %v3114_v53, %v2040_v1 }
 0x461   :  { %v1536_v61 = vpop.f32.mrf.mxu0 }
 0x462   :  { %1603 = vst [vmem:[#allocation10 + $0x38] sm:$0xff] %v1587_v12  ;;  %v1585_v62 = vmul.f32 %v3124_v23, %v1536_v61 }
 0x463   :  { %v2043_v20 = vpop.f32.mrf.mxu0 }
 0x464   :  { %1601 = vst [vmem:[#allocation10 + $0x28] sm:$0xff] %v1585_v62  ;;  %v1590_v3 = vmul.f32 %v2190_v27, %v2043_v20 }
 0x465   :  { %v1549_v32 = vpop.f32.mrf.mxu0 }
 0x466   :  { %1606 = vst [vmem:[#allocation10 + $0x50] sm:$0xff] %v1590_v3  ;;  %v1588_v58 = vmul.f32 %v2194_v17, %v1549_v32 }
 0x467   :  { %v2044_v34 = vpop.f32.mrf.mxu0 }
 0x468   :  { %1604 = vst [vmem:[#allocation10 + $0x40] sm:$0xff] %v1588_v58  ;;  %v1591_v56 = vmul.f32 %v3131_v14, %v2044_v34 }
 0x469   :  { %v1552_v11 = vpop.f32.mrf.mxu0 }
 0x46a   :  { %1607 = vst [vmem:[#allocation10 + $0x58] sm:$0xff] %v1591_v56  ;;  %v1589_v28 = vmul.f32 %v3138_v54, %v1552_v11 }
 0x46b   :  { %v2047_v63 = vpop.f32.mrf.mxu0 }
 0x46c   :  { %1605 = vst [vmem:[#allocation10 + $0x48] sm:$0xff] %v1589_v28  ;;  %v1594_v0 = vmul.f32 %v2202_v5, %v2047_v63 }
 0x46d   :  { %v1565_v49 = vpop.f32.mrf.mxu0 }
 0x46e   :  { %1610 = vst [vmem:[#allocation10 + $0x70] sm:$0xff] %v1594_v0  ;;  %v1592_v37 = vmul.f32 %v3147_v57, %v1565_v49 }
 0x46f   :  { %v2048_v2 = vpop.f32.mrf.mxu0 }
 0x470   :  { %1608 = vst [vmem:[#allocation10 + $0x60] sm:$0xff] %v1592_v37  ;;  %v1595_v53 = vmul.f32 %v3155_v16, %v2048_v2 }
 0x471   :  { %v1568_v45 = vpop.f32.mrf.mxu0 }
 0x472   :  { %1611 = vst [vmem:[#allocation10 + $0x78] sm:$0xff] %v1595_v53  ;;  %v1593_v44 = vmul.f32 %v3145_v29, %v1568_v45 }
 0x474   :  { %1609 = vst [vmem:[#allocation10 + $0x68] sm:$0xff] %v1593_v44 }
 0x475   :  { %2314 = shalt.err (!%p2311_p1)
}
 0x476   :  { %s2341_s11 = smov 128   ;;  %s2342_s12 = smov 8  }
 0x477   :  { %1623 = dma.vmem_to_hbm [thread:$0]  %s1618_s9, 2048, %s3190_s7, [#allocation4], %s2341_s11, %s2341_s11, %s2342_s12  }
 0x478   :  { %2329 = dma.done.wait [#allocation4], 2048  }
 0x479   :  { %2330 = vsyncadd [#allocation4], 4294965248 }
 0x47a   :  { %2331 = dma.done.wait [#allocation12], 1024  }
 0x47b   :  { %2332 = vsyncadd [#allocation12], 4294966272 }
 0x47c   :  { %1642 = vsyncpa [#allocation3], 1 }
 0x47d   :  { %1643 = vsyncpa [#allocation6], 1 }
 0x47e   :  { %1644 = vsyncpa [#allocation9], 1 }
 0x47f   :  { %1645 = vsyncpa [#allocation4], 1 }
 0x480   :  { %1646 = vsyncpa [#allocation12], 1 }

</bundles_post_ra>
